<compile_context>
chip_gen: v7x
topology: tpu7x:2x2x1
jax: 0.10.0
libtpu: 0.0.40
codegen_flags: <defaults>
</compile_context>

<pallas_src>
import functools
import math

import jax
import jax.numpy as jnp
from jax import lax
from jax.experimental import pallas as pl
from jax.experimental.pallas import tpu as pltpu


# ----------------------------------------------------------------------------
# Pallas kernel: fused reflect-padded 3x3 conv + (folded) BN bias + sigmoid
# ----------------------------------------------------------------------------
def _conv7_kernel(x_ref, w_ref, b_ref, o_ref, *, NB, H, Wp, Cin, Cout):
    # x_ref: (NB, Cin, Hp*Wp + 2) f32   flattened reflect-padded images
    # w_ref: (9, Cout, Cin)       f32   BN-folded weights, tap-major (tap=dy*3+dx)
    # b_ref: (Cout,)              f32   BN-folded bias, in SMEM
    # o_ref: (NB, Cout, H*Wp)     f32   lane-dense output (padded-stride cols kept)
    HWp = H * Wp
    for n in range(NB):                      # static unroll; NB is 1 or N (tiny)
        acc = None
        for dy in range(3):
            for dx in range(3):
                tap = dy * 3 + dx
                off = dy * Wp + dx
                # Each tap: (Cout, Cin) @ (Cin, HWp) -> f32 accumulate on MXU.
                contrib = jnp.dot(
                    w_ref[tap],                         # (Cout, Cin)
                    x_ref[n, :, off:off + HWp],         # (Cin, HWp) contiguous lanes
                    preferred_element_type=jnp.float32)
                acc = contrib if acc is None else acc + contrib
        # Epilogue: bias (scalar reads from SMEM) + sigmoid, f32, per channel.
        for c in range(Cout):
            o_ref[n, c:c + 1, :] = jax.nn.sigmoid(acc[c:c + 1, :] + b_ref[c])


def _tensorcores_per_chip():
    """Best-effort detection: v7x has 2 TensorCores per chip, v5e/v6e have 1."""
    try:
        kind = jax.devices()[0].device_kind.lower()
    except Exception:
        return 1
    return 2 if ("v7" in kind or "tpu7" in kind) else 1


def conv7_forward(params, x, *, images_per_step=None):
    """x: (N, Cin, H, W) float32 NCHW  ->  (N, Cout, H, W) float32."""
    w, b = params["w"], params["b"]          # (Cout, Cin, 3, 3), (Cout,)
    N, Cin, H, W = x.shape
    Cout = w.shape[0]
    Hp, Wp = H + 2, W + 2
    HWp = H * Wp
    FLAT = Hp * Wp + 2                       # +2 keeps the last tap slice in-bounds

    if images_per_step is None:
        # v7x: one image per grid step so each TensorCore takes a batch element.
        # v5e/v6e: grid is a sequential loop -> fold the whole batch into one step.
        images_per_step = 1 if _tensorcores_per_chip() >= 2 else N
    NB = max(1, min(int(images_per_step), N))
    while N % NB:                            # ensure the grid divides the batch
        NB -= 1

    # Wrapper-side layout plumbing only (reflect pad + flatten; no dtype cast).
    x_pad = jnp.pad(x, ((0, 0), (0, 0), (1, 1), (1, 1)), mode="reflect")
    x_flat = jnp.pad(x_pad.reshape(N, Cin, Hp * Wp), ((0, 0), (0, 0), (0, 2)))

    # (Cout, Cin, 3, 3) -> (9, Cout, Cin), tap-major so each tap's weights are a
    # separately addressable (Cout, Cin) slab (no lane-offset slicing in-kernel).
    w_taps = jnp.transpose(w, (2, 3, 0, 1)).reshape(9, Cout, Cin).astype(jnp.float32)
    b_vec = b.astype(jnp.float32).reshape(Cout)

    # TODO(synk): for large images (H*(W+2) >> a few K lanes) add a row-tile
    #             grid axis so the (Cin, FLAT) input block stays VMEM-bounded.
    kernel = functools.partial(_conv7_kernel, NB=NB, H=H, Wp=Wp, Cin=Cin, Cout=Cout)
    out_flat = pl.pallas_call(
        kernel,
        out_shape=jax.ShapeDtypeStruct((N, Cout, HWp), jnp.float32),
        grid=(N // NB,),
        in_specs=[
            pl.BlockSpec((NB, Cin, FLAT), lambda n: (n, 0, 0)),
            pl.BlockSpec((9, Cout, Cin), lambda n: (0, 0, 0)),
            pl.BlockSpec(memory_space=pltpu.MemorySpace.SMEM),   # bias -> SMEM
        ],
        out_specs=pl.BlockSpec((NB, Cout, HWp), lambda n: (n, 0, 0)),
        compiler_params=pltpu.CompilerParams(
            dimension_semantics=("parallel",),
            vmem_limit_bytes=32 * 1024 * 1024,
        ),
    )(x_flat, w_taps, b_vec)

    # Drop the padded-stride garbage columns (w >= W); free wrapper reshape.
    return out_flat.reshape(N, Cout, H, Wp)[:, :, :, :W]


# ----------------------------------------------------------------------------
# Parameter init (deterministic, synthetic) + eval-mode BN folding
# ----------------------------------------------------------------------------
def init_conv7_params(key, cin, cout, eps=1e-5):
    k1, k2, k3, k4, k5, k6 = jax.random.split(key, 6)
    bound = 1.0 / math.sqrt(cin * 9)
    w = jax.random.uniform(k1, (cout, cin, 3, 3), jnp.float32, -bound, bound)
    b = jax.random.uniform(k2, (cout,), jnp.float32, -bound, bound)
    # Non-trivial eval-mode BatchNorm2d parameters so the fold matters.
    gamma = 1.0 + 0.1 * jax.random.normal(k3, (cout,), jnp.float32)
    beta = 0.1 * jax.random.normal(k4, (cout,), jnp.float32)
    r_mean = 0.1 * jax.random.normal(k5, (cout,), jnp.float32)
    r_var = 1.0 + 0.1 * jax.random.uniform(k6, (cout,), jnp.float32)
    scale = gamma / jnp.sqrt(r_var + eps)
    w_folded = w * scale[:, None, None, None]
    b_folded = (b - r_mean) * scale + beta
    return dict(w=w_folded, b=b_folded)


# ----------------------------------------------------------------------------
# Pure-JAX reference (correctness check)
# ----------------------------------------------------------------------------
def conv7_ref(params, x):
    x_pad = jnp.pad(x, ((0, 0), (0, 0), (1, 1), (1, 1)), mode="reflect")
    y = lax.conv_general_dilated(
        x_pad, params["w"], (1, 1), "VALID",
        dimension_numbers=("NCHW", "OIHW", "NCHW"))
    y = y + params["b"][None, :, None, None]
    return jax.nn.sigmoid(y)


# ----------------------------------------------------------------------------
if __name__ == "__main__":
    # Small shapes consistent with Conv7(in_channels=64, out_channels=1).
    N, H, W = 2, 16, 16
    in_channels, out_channels = 64, 1

    key = jax.random.PRNGKey(0)
    kp, kx = jax.random.split(key)
    params = init_conv7_params(kp, in_channels, out_channels)
    x = jax.random.normal(kx, (N, in_channels, H, W), jnp.float32)

    ref = jax.block_until_ready(conv7_ref(params, x))

    # Exercise both batching strategies (per-image grid step and whole-batch
    # single step) so the kernel is validated regardless of chip generation.
    for nb in sorted({1, N}):
        out = jax.block_until_ready(conv7_forward(params, x, images_per_step=nb))
        assert out.shape == (N, out_channels, H, W), out.shape
        err = float(jnp.max(jnp.abs(out - ref)))
        assert err < 1e-2, f"images_per_step={nb}: max abs err {err}"

    # Default (device-aware) path.
    out = jax.block_until_ready(conv7_forward(params, x))
    err = float(jnp.max(jnp.abs(out - ref)))
    assert err < 1e-2, f"max abs err {err}"

    print("KERNEL_OK")
</pallas_src>

<mosaic_0001>
module attributes {stable_mosaic.version = 11 : i64} {
  func.func @_conv7_kernel(%arg0: i32, %arg1: memref<1x64x326xf32, #tpu.memory_space<vmem>>, %arg2: memref<9x1x64xf32, #tpu.memory_space<vmem>>, %arg3: memref<1xf32, #tpu.memory_space<smem>>, %arg4: memref<1x1x288xf32, #tpu.memory_space<vmem>>) attributes {dimension_semantics = [#tpu.dimension_semantics<parallel>], iteration_bounds = array<i64: 2>, scalar_prefetch = 0 : i64, scratch_operands = 0 : i64, tpu.core_type = #tpu.core_type<tc>, window_params = [{transform_indices = @transform_0, window_bounds = array<i64: 1, 64, 326>}, {pipeline_mode = #tpu.pipeline_mode<synchronous>, transform_indices = @transform_1, window_bounds = array<i64: 9, 1, 64>}, {transform_indices = @transform_2, window_bounds = array<i64: 1>}, {transform_indices = @transform_3, window_bounds = array<i64: 1, 1, 288>}]} {
    %c0 = arith.constant 0 : index
    %c0_0 = arith.constant 0 : index
    %c0_1 = arith.constant 0 : index
    %0 = vector.load %arg2[%c0, %c0_0, %c0_1] : memref<9x1x64xf32, #tpu.memory_space<vmem>>, vector<1x1x64xf32>
    %1 = vector.shape_cast %0 : vector<1x1x64xf32> to vector<1x64xf32>
    %c0_2 = arith.constant 0 : index
    %c0_3 = arith.constant 0 : index
    %c0_4 = arith.constant 0 : index
    %2 = vector.load %arg1[%c0_2, %c0_3, %c0_4] : memref<1x64x326xf32, #tpu.memory_space<vmem>>, vector<1x64x288xf32>
    %3 = vector.shape_cast %2 : vector<1x64x288xf32> to vector<64x288xf32>
    %cst = arith.constant dense<0.000000e+00> : vector<1x288xf32>
    %4 = tpu.matmul %1, %3, %cst {dimension_numbers = #tpu.dot_dimension_numbers<[1], [0], [0], [1], [0, 0, 1, 1], [], []>} : vector<1x64xf32>, vector<64x288xf32>, vector<1x288xf32> -> vector<1x288xf32>
    %c1 = arith.constant 1 : index
    %c0_5 = arith.constant 0 : index
    %c0_6 = arith.constant 0 : index
    %5 = vector.load %arg2[%c1, %c0_5, %c0_6] : memref<9x1x64xf32, #tpu.memory_space<vmem>>, vector<1x1x64xf32>
    %6 = vector.shape_cast %5 : vector<1x1x64xf32> to vector<1x64xf32>
    %c0_7 = arith.constant 0 : index
    %c0_8 = arith.constant 0 : index
    %c1_9 = arith.constant 1 : index
    %7 = vector.load %arg1[%c0_7, %c0_8, %c1_9] : memref<1x64x326xf32, #tpu.memory_space<vmem>>, vector<1x64x288xf32>
    %8 = vector.shape_cast %7 : vector<1x64x288xf32> to vector<64x288xf32>
    %cst_10 = arith.constant dense<0.000000e+00> : vector<1x288xf32>
    %9 = tpu.matmul %6, %8, %cst_10 {dimension_numbers = #tpu.dot_dimension_numbers<[1], [0], [0], [1], [0, 0, 1, 1], [], []>} : vector<1x64xf32>, vector<64x288xf32>, vector<1x288xf32> -> vector<1x288xf32>
    %10 = arith.addf %4, %9 : vector<1x288xf32>
    %c2 = arith.constant 2 : index
    %c0_11 = arith.constant 0 : index
    %c0_12 = arith.constant 0 : index
    %11 = vector.load %arg2[%c2, %c0_11, %c0_12] : memref<9x1x64xf32, #tpu.memory_space<vmem>>, vector<1x1x64xf32>
    %12 = vector.shape_cast %11 : vector<1x1x64xf32> to vector<1x64xf32>
    %c0_13 = arith.constant 0 : index
    %c0_14 = arith.constant 0 : index
    %c2_15 = arith.constant 2 : index
    %13 = vector.load %arg1[%c0_13, %c0_14, %c2_15] : memref<1x64x326xf32, #tpu.memory_space<vmem>>, vector<1x64x288xf32>
    %14 = vector.shape_cast %13 : vector<1x64x288xf32> to vector<64x288xf32>
    %cst_16 = arith.constant dense<0.000000e+00> : vector<1x288xf32>
    %15 = tpu.matmul %12, %14, %cst_16 {dimension_numbers = #tpu.dot_dimension_numbers<[1], [0], [0], [1], [0, 0, 1, 1], [], []>} : vector<1x64xf32>, vector<64x288xf32>, vector<1x288xf32> -> vector<1x288xf32>
    %16 = arith.addf %10, %15 : vector<1x288xf32>
    %c3 = arith.constant 3 : index
    %c0_17 = arith.constant 0 : index
    %c0_18 = arith.constant 0 : index
    %17 = vector.load %arg2[%c3, %c0_17, %c0_18] : memref<9x1x64xf32, #tpu.memory_space<vmem>>, vector<1x1x64xf32>
    %18 = vector.shape_cast %17 : vector<1x1x64xf32> to vector<1x64xf32>
    %c0_19 = arith.constant 0 : index
    %c0_20 = arith.constant 0 : index
    %c18 = arith.constant 18 : index
    %19 = vector.load %arg1[%c0_19, %c0_20, %c18] : memref<1x64x326xf32, #tpu.memory_space<vmem>>, vector<1x64x288xf32>
    %20 = vector.shape_cast %19 : vector<1x64x288xf32> to vector<64x288xf32>
    %cst_21 = arith.constant dense<0.000000e+00> : vector<1x288xf32>
    %21 = tpu.matmul %18, %20, %cst_21 {dimension_numbers = #tpu.dot_dimension_numbers<[1], [0], [0], [1], [0, 0, 1, 1], [], []>} : vector<1x64xf32>, vector<64x288xf32>, vector<1x288xf32> -> vector<1x288xf32>
    %22 = arith.addf %16, %21 : vector<1x288xf32>
    %c4 = arith.constant 4 : index
    %c0_22 = arith.constant 0 : index
    %c0_23 = arith.constant 0 : index
    %23 = vector.load %arg2[%c4, %c0_22, %c0_23] : memref<9x1x64xf32, #tpu.memory_space<vmem>>, vector<1x1x64xf32>
    %24 = vector.shape_cast %23 : vector<1x1x64xf32> to vector<1x64xf32>
    %c0_24 = arith.constant 0 : index
    %c0_25 = arith.constant 0 : index
    %c19 = arith.constant 19 : index
    %25 = vector.load %arg1[%c0_24, %c0_25, %c19] : memref<1x64x326xf32, #tpu.memory_space<vmem>>, vector<1x64x288xf32>
    %26 = vector.shape_cast %25 : vector<1x64x288xf32> to vector<64x288xf32>
    %cst_26 = arith.constant dense<0.000000e+00> : vector<1x288xf32>
    %27 = tpu.matmul %24, %26, %cst_26 {dimension_numbers = #tpu.dot_dimension_numbers<[1], [0], [0], [1], [0, 0, 1, 1], [], []>} : vector<1x64xf32>, vector<64x288xf32>, vector<1x288xf32> -> vector<1x288xf32>
    %28 = arith.addf %22, %27 : vector<1x288xf32>
    %c5 = arith.constant 5 : index
    %c0_27 = arith.constant 0 : index
    %c0_28 = arith.constant 0 : index
    %29 = vector.load %arg2[%c5, %c0_27, %c0_28] : memref<9x1x64xf32, #tpu.memory_space<vmem>>, vector<1x1x64xf32>
    %30 = vector.shape_cast %29 : vector<1x1x64xf32> to vector<1x64xf32>
    %c0_29 = arith.constant 0 : index
    %c0_30 = arith.constant 0 : index
    %c20 = arith.constant 20 : index
    %31 = vector.load %arg1[%c0_29, %c0_30, %c20] : memref<1x64x326xf32, #tpu.memory_space<vmem>>, vector<1x64x288xf32>
    %32 = vector.shape_cast %31 : vector<1x64x288xf32> to vector<64x288xf32>
    %cst_31 = arith.constant dense<0.000000e+00> : vector<1x288xf32>
    %33 = tpu.matmul %30, %32, %cst_31 {dimension_numbers = #tpu.dot_dimension_numbers<[1], [0], [0], [1], [0, 0, 1, 1], [], []>} : vector<1x64xf32>, vector<64x288xf32>, vector<1x288xf32> -> vector<1x288xf32>
    %34 = arith.addf %28, %33 : vector<1x288xf32>
    %c6 = arith.constant 6 : index
    %c0_32 = arith.constant 0 : index
    %c0_33 = arith.constant 0 : index
    %35 = vector.load %arg2[%c6, %c0_32, %c0_33] : memref<9x1x64xf32, #tpu.memory_space<vmem>>, vector<1x1x64xf32>
    %36 = vector.shape_cast %35 : vector<1x1x64xf32> to vector<1x64xf32>
    %c0_34 = arith.constant 0 : index
    %c0_35 = arith.constant 0 : index
    %c36 = arith.constant 36 : index
    %37 = vector.load %arg1[%c0_34, %c0_35, %c36] : memref<1x64x326xf32, #tpu.memory_space<vmem>>, vector<1x64x288xf32>
    %38 = vector.shape_cast %37 : vector<1x64x288xf32> to vector<64x288xf32>
    %cst_36 = arith.constant dense<0.000000e+00> : vector<1x288xf32>
    %39 = tpu.matmul %36, %38, %cst_36 {dimension_numbers = #tpu.dot_dimension_numbers<[1], [0], [0], [1], [0, 0, 1, 1], [], []>} : vector<1x64xf32>, vector<64x288xf32>, vector<1x288xf32> -> vector<1x288xf32>
    %40 = arith.addf %34, %39 : vector<1x288xf32>
    %c7 = arith.constant 7 : index
    %c0_37 = arith.constant 0 : index
    %c0_38 = arith.constant 0 : index
    %41 = vector.load %arg2[%c7, %c0_37, %c0_38] : memref<9x1x64xf32, #tpu.memory_space<vmem>>, vector<1x1x64xf32>
    %42 = vector.shape_cast %41 : vector<1x1x64xf32> to vector<1x64xf32>
    %c0_39 = arith.constant 0 : index
    %c0_40 = arith.constant 0 : index
    %c37 = arith.constant 37 : index
    %43 = vector.load %arg1[%c0_39, %c0_40, %c37] : memref<1x64x326xf32, #tpu.memory_space<vmem>>, vector<1x64x288xf32>
    %44 = vector.shape_cast %43 : vector<1x64x288xf32> to vector<64x288xf32>
    %cst_41 = arith.constant dense<0.000000e+00> : vector<1x288xf32>
    %45 = tpu.matmul %42, %44, %cst_41 {dimension_numbers = #tpu.dot_dimension_numbers<[1], [0], [0], [1], [0, 0, 1, 1], [], []>} : vector<1x64xf32>, vector<64x288xf32>, vector<1x288xf32> -> vector<1x288xf32>
    %46 = arith.addf %40, %45 : vector<1x288xf32>
    %c8 = arith.constant 8 : index
    %c0_42 = arith.constant 0 : index
    %c0_43 = arith.constant 0 : index
    %47 = vector.load %arg2[%c8, %c0_42, %c0_43] : memref<9x1x64xf32, #tpu.memory_space<vmem>>, vector<1x1x64xf32>
    %48 = vector.shape_cast %47 : vector<1x1x64xf32> to vector<1x64xf32>
    %c0_44 = arith.constant 0 : index
    %c0_45 = arith.constant 0 : index
    %c38 = arith.constant 38 : index
    %49 = vector.load %arg1[%c0_44, %c0_45, %c38] : memref<1x64x326xf32, #tpu.memory_space<vmem>>, vector<1x64x288xf32>
    %50 = vector.shape_cast %49 : vector<1x64x288xf32> to vector<64x288xf32>
    %cst_46 = arith.constant dense<0.000000e+00> : vector<1x288xf32>
    %51 = tpu.matmul %48, %50, %cst_46 {dimension_numbers = #tpu.dot_dimension_numbers<[1], [0], [0], [1], [0, 0, 1, 1], [], []>} : vector<1x64xf32>, vector<64x288xf32>, vector<1x288xf32> -> vector<1x288xf32>
    %52 = arith.addf %46, %51 : vector<1x288xf32>
    %c0_47 = arith.constant 0 : index
    %53 = memref.load %arg3[%c0_47] : memref<1xf32, #tpu.memory_space<smem>>
    %54 = vector.broadcast %53 : f32 to vector<1x288xf32>
    %55 = arith.addf %52, %54 : vector<1x288xf32>
    %56 = arith.negf %55 : vector<1x288xf32>
    %57 = math.exp %56 : vector<1x288xf32>
    %cst_48 = arith.constant 1.000000e+00 : f32
    %58 = vector.broadcast %cst_48 : f32 to vector<1x288xf32>
    %59 = arith.addf %58, %57 : vector<1x288xf32>
    %60 = arith.divf %58, %59 : vector<1x288xf32>
    %c0_49 = arith.constant 0 : index
    %c0_50 = arith.constant 0 : index
    %c0_51 = arith.constant 0 : index
    %61 = vector.load %arg4[%c0_49, %c0_50, %c0_51] : memref<1x1x288xf32, #tpu.memory_space<vmem>>, vector<1x1x288xf32>
    %62 = vector.shape_cast %61 : vector<1x1x288xf32> to vector<1x288xf32>
    %63 = vector.shape_cast %60 : vector<1x288xf32> to vector<1x1x288xf32>
    tpu.vector_store %arg4[%c0_49, %c0_50, %c0_51], %63 {strides = array<i32>} : memref<1x1x288xf32, #tpu.memory_space<vmem>>, vector<1x1x288xf32>,
    return
  }
  func.func @transform_0(%arg0: i32) -> (i32, i32, i32) {
    %c0_i32 = arith.constant 0 : i32
    %c0_i32_0 = arith.constant 0 : i32
    %c0_i32_1 = arith.constant 0 : i32
    return %arg0, %c0_i32, %c0_i32_0 : i32, i32, i32
  }
  func.func @transform_1(%arg0: i32) -> (i32, i32, i32) {
    %c0_i32 = arith.constant 0 : i32
    %c0_i32_0 = arith.constant 0 : i32
    %c0_i32_1 = arith.constant 0 : i32
    %c0_i32_2 = arith.constant 0 : i32
    return %c0_i32, %c0_i32_0, %c0_i32_1 : i32, i32, i32
  }
  func.func @transform_2(%arg0: i32) -> i32 {
    %c0_i32 = arith.constant 0 : i32
    %c0_i32_0 = arith.constant 0 : i32
    return %c0_i32 : i32
  }
  func.func @transform_3(%arg0: i32) -> (i32, i32, i32) {
    %c0_i32 = arith.constant 0 : i32
    %c0_i32_0 = arith.constant 0 : i32
    %c0_i32_1 = arith.constant 0 : i32
    return %arg0, %c0_i32, %c0_i32_0 : i32, i32, i32
  }
}

</mosaic_0001>

<bundles_post_ra>
// kernel: tpu_custom_call.1
= control target key start
LH: loop header
LB: loop body
LE: loop exit
PB: predicated region body
PF: predicated region fallthrough
CT: control target
= control target key end

     0   :  { %s4503_s0 = inlined_call_operand.hbm [shape: f32[2,64,326], index: 0, kind: input, shape index: {}]   ;;  %s4504_s1 = inlined_call_operand.hbm [shape: f32[9,1,64], index: 1, kind: input, shape index: {}]   ;;  %s4505_s2 = inlined_call_operand.<no memory space> [shape: f32[1], index: 2, kind: input, shape index: {}]   ;;  %s4506_s3 = inlined_call_operand.hbm [shape: f32[2,1,288], index: 3, kind: output, shape index: {}]  }
   0x1   :  { %8 = sst [smem:[#allocation2]] %s4505_s2 }
   0x2   :  { %9 = vsyncpa [#allocation4], 0 }
   0x3   :  { %11 = vsyncpa [#allocation4 + $0x1], 0 }
   0x4   :  { %12 = vsyncpa [#allocation7], 0 }
   0x5   :  { %13 = vsyncpa [#allocation5], 0 }
   0x6   :  { %15 = vsyncpa [#allocation5 + $0x1], 0  ;;  %s3743_s14 = smov 0   ;;  %s3745_s15 = smov 0  }
   0x7   :  { %s3747_s16 = smov 0   ;;  %s3749_s17 = smov 0  }
   0x8 LB: > { %s3764_s2 = sadd.s32 4294967295, %s3699_s17   ;;  %s2450_s18 = sadd.s32 4294967294, %s3699_s17   ;;  %s3699_s17 = sphi %s3749_s17, %s4536_s17   ;;  %s3695_s16 = sphi %s3747_s16, %s4535_s16   ;;  %s3691_s15 = sphi %s3745_s15, %s4534_s15   ;;  %s3687_s14 = sphi %s3743_s14, %s4533_s14  }
   0x9   : > { %p41_p0 = scmp.ne.s32.totalorder %s3691_s15, %s3687_s14  ;;  %p4507_p1 = scmp.eq.s32.totalorder %s3764_s2, 0 }
   0xa   : > { %p113_p3 = scmp.eq.s32.totalorder %s2450_s18, 1  ;;  %p2451_p5 = scmp.ge.s32.totalorder %s3699_s17, 1 }
   0xb   : > { %p3773_p4 = por %p4507_p1, %p41_p0  ;;  %p120_p7 = scmp.lt.s32.totalorder %s3699_s17, 3 }
   0xc   : > { %p3778_p6 = por %p113_p3, %p41_p0  ;;  %s3701_s22 = smov [#allocation6]  }
   0xd   : > { %s4512_s19 = scalar_select %p3773_p4, 1, 0 }
   0xe   : > { %s4513_s20 = scalar_select %p3778_p6, 1, 0 }
   0xf   : > { %p3783_p8 = pnand %p2451_p5, %p120_p7  ;;  %s132_s23 = sshll.u32 %s3701_s22, 4  ;;  %s3787_s23 = int_to_ptr.vmem [resolvable:$true] %s132_s23 }
  0x10   : > { %s3799_s25 = sadd.s32 1, %s3699_s17   ;;  %s28_s26 = sadd.s32 1, %s3695_s16 }
  0x11   : > { %p3014_p9 = pneg %p3783_p8  ;;  %s25_s27 = ssub.s32 %s3699_s17, %s3799_s25 }
  0x12   : > { %s3571_s30 = scalar_lea.hbm %s4504_s1, 144 }
  0x13   : > { %p3794_p11 = pnand %p3014_p9, %p4507_p1  ;;  %p3572_p12 = scmp.ne.s32.totalorder %s4504_s1, %s3571_s30 }
  0x14   : > { %p3578_p5 = scmp.lt.u32.totalorder %s3571_s30, %s4504_s1 }
  0x15   : > { %p3573_p13 = pneg %p3794_p11 }
  0x17   : > { %p3574_p0 = pnand %p3573_p13, %p3572_p12 }
  0x19   : > { %p3575_p3 = pneg %p3574_p0 }
  0x1b   : > { %p3580_p7 = pnand %p3578_p5, %p3575_p3 }
  0x1d   : > { %3583 = shalt.err (!%p3580_p7)
}
  0x1e   : > { %s3584_s8 = scalar_lea.vmem %s3787_s23, 144  ;;  %s3591_s9 = scalar_lea.vmem %s3787_s23, 160 }
  0x1f   : > { %p3585_p9 = scmp.ne.s32.totalorder %s3787_s23, %s3584_s8  ;;  %p3592_p2 = scmp.lt.s32.totalorder %s3787_s23, %s3787_s23 }
  0x20   : > { %p3593_p6 = scmp.lt.s32.totalorder %s3591_s9, %s3584_s8 }
  0x21   : > { %p3587_p10 = pnand %p3585_p9, %p3573_p13 }
  0x22   : > { %p3594_p12 = por %p3593_p6, %p3592_p2 }
  0x23   : > { %p3588_p1 = pneg %p3587_p10 }
  0x25   : > { %p3595_p0 = pnand %p3594_p12, %p3588_p1 }
  0x27   : > { %3598 = shalt.err (!%p3595_p0)
}
  0x28   : > { %s3702_s10 = smov 16   ;;  %s3703_s11 = smov 1  }
  0x29   : > { %3017 = dma.hbm_to_vmem [thread:$0]  (!%p3794_p11), %s4504_s1, 144, %s3787_s23, [#allocation7], %s3702_s10, %s3702_s10, %s3703_s11  }
  0x2a   : > { %p26_p2 = scmp.eq.s32.totalorder %s25_s27, 0  ;;  %p35_p1 = scmp.ne.s32.totalorder %s3695_s16, %s3691_s15 }
  0x2b   : > { %p36_p6 = scmp.eq.s32.totalorder %s3699_s17, 0  ;;  %p3027_p10 = scmp.lt.s32.totalorder %s3699_s17, 2 }
  0x2c   : > { %s3831_s18 = scalar_select %p26_p2, %s3695_s16, %s28_s26  }
  0x2d   : > { %p37_p13 = por %p36_p6, %p35_p1  ;;  %p4516_p3 = scmp.eq.s32.totalorder %s3764_s2, 1 }
  0x2e   : > { %s149_s28 = sand.u32 1, %s3695_s16   ;;  %s3002_s29 = smul.u32 3072, %s3699_s17 }
  0x2f   : > { %p3835_p5 = por %p4516_p3, %p35_p1  ;;  %s3001_s30 = smul.u32 192, %s149_s28 }
  0x30   : > { %s3844_s5 = scalar_lea.hbm %s4503_s0, %s3002_s29  ;;  %p3846_p11 = pnand %p3027_p10, %p37_p13 }
  0x31   : > { %s4517_s22 = scalar_select %p3835_p5, 1, 0 }
  0x32   : > { %s153_s26 = scalar_lea.vmem [#allocation3], %s3001_s30  ;;  %s3852_s6 = scalar_lea.sflag [#allocation4], %s149_s28 }
  0x33   : > { %s160_s27 = sshll.u32 %s153_s26, 4  ;;  %s3599_s7 = scalar_lea.hbm %s3844_s5, 3072  ;;  %s3850_s27 = int_to_ptr.vmem [resolvable:$true] %s160_s27 }
  0x34   : > { %p3600_p7 = scmp.ne.s32.totalorder %s3844_s5, %s3599_s7  ;;  %p3601_p9 = pneg %p3846_p11 }
  0x35   : > { %s3604_s10 = scalar_lea.hbm %s4503_s0, 6144  ;;  %p3605_p2 = scmp.lt.u32.totalorder %s3844_s5, %s4503_s0 }
  0x36   : > { %p3602_p12 = pnand %p3601_p9, %p3600_p7  ;;  %p3606_p1 = scmp.lt.u32.totalorder %s3604_s10, %s3599_s7 }
  0x37   : > { %p3608_p10 = scmp.lt.u32.totalorder %s3599_s7, %s3844_s5 }
  0x38   : > { %p3603_p0 = pneg %p3602_p12  ;;  %p3607_p6 = por %p3606_p1, %p3605_p2 }
  0x3a   : > { %p3609_p13 = por %p3608_p10, %p3607_p6 }
  0x3c   : > { %p3610_p3 = pnand %p3609_p13, %p3603_p0 }
  0x3e   : > { %3613 = shalt.err (!%p3610_p3)
}
  0x3f   : > { %s3614_s13 = scalar_lea.vmem %s3850_s27, 3072  ;;  %s3704_s28 = smov [#allocation3]  }
  0x40   : > { %p3615_p7 = scmp.ne.s32.totalorder %s3850_s27, %s3614_s13  ;;  %s3619_s29 = sshll.u32 %s3704_s28, 4  ;;  %s3620_s29 = int_to_ptr.vmem [resolvable:$false] %s3619_s29 }
  0x41   : > { %s3621_s30 = scalar_lea.vmem %s3620_s29, 6144  ;;  %p3622_p4 = scmp.lt.s32.totalorder %s3850_s27, %s3620_s29 }
  0x42   : > { %p3617_p12 = pnand %p3615_p7, %p3601_p9  ;;  %p3623_p2 = scmp.lt.s32.totalorder %s3621_s30, %s3614_s13 }
  0x44   : > { %p3618_p5 = pneg %p3617_p12  ;;  %p3624_p1 = por %p3623_p2, %p3622_p4 }
  0x46   : > { %p3625_p6 = pnand %p3624_p1, %p3618_p5 }
  0x48   : > { %3628 = shalt.err (!%p3625_p6)
}
  0x49   : > { %s3705_s24 = smov 384   ;;  %s3706_s4 = smov 24  }
  0x4a   : > { %3021 = dma.hbm_to_vmem [thread:$0]  (!%p3846_p11), %s3844_s5, 3072, %s3850_s27, %s3852_s6, %s3705_s24, %s3705_s24, %s3706_s4  }
  0x4b   : > { %172 = sbr.rel (%p3783_p8) target bundleno = 665 (0x299), region = 32  ;;  %s3883_s26 = sand.u32 (!%p3783_p8), 1, %s3691_s15  }
  0x4c   : > { %s3003_s7 = smul.u32 (!%p3783_p8), 192, %s3883_s26  ;;  %s175_s8 = scalar_lea.sflag (!%p3783_p8), [#allocation4], %s3883_s26 }
  0x4d   : > { %p4519_p4 = scmp.ne.s32.totalorder (!%p3783_p8), %s4512_s19, 0 }
  0x4e   : > { %s3887_s9 = scalar_lea.vmem (!%p3783_p8), [#allocation3], %s3003_s7 }
  0x52   : > { %3674 = dma.done.wait (%p4519_p4), %s175_s8, 3072  }
  0x53   : > { %3676 = vsyncadd (%p4519_p4), %s175_s8, 4294964224  ;;  %p4520_p5 = scmp.eq.s32.totalorder %s3764_s2, 0 }
  0x55   : > { %3678 = dma.done.wait (%p4520_p5), [#allocation7], 144   ;;  %p4521_p8 = pmov %p4520_p5 }
  0x56   : > { %v3707_v0 = vmov 0.0|0.0   ;;  %v3899_v1 = vld [vmem:[%s3887_s9 + $0x8] sm:$0xff]  ;;  %v3902_v2 = vld [vmem:[%s3887_s9 + $0x10] sm:$0xff]  ;;  %v3905_v3 = vld [vmem:[%s3887_s9] sm:$0xff]  ;;  %s3708_s19 = smov 127   ;;  %vm3709_vm0 = vmmov 0  }
  0x57   : > { %3680 = vsyncadd (%p4521_p8), [#allocation7], 4294967152  ;;  %2749 = vmatprep.subr.bf16.mxu1 %v3707_v0  ;;  %v3909_v4 = vpack.i.bf16 %v3902_v2, %v3899_v1  ;;  %v3912_v5 = vld [vmem:[%s3887_s9 + $0x18] sm:$0xff]  ;;  %v3915_v6 = vld [vmem:[%s3887_s9 + $0x20] sm:$0xff]  ;;  %v4510_v37 = vmov 0.0   ;;  %s3711_s21 = smov 126  }
  0x58   : > { %v3918_v7 = vld [vmem:[%s3887_s9 + $0x28] sm:$0xff]  ;;  %v3922_v8 = vpack.i.bf16 %v3912_v5, %v3905_v3  ;;  %v3925_v9 = vld [vmem:[%s3887_s9 + $0x38] sm:$0xff]  ;;  %v3928_v10 = vld [vmem:[%s3887_s9 + $0x40] sm:$0xff]  ;;  %2578 = vmatprep.mubr.msk.f32.mxu1 %vm3709_vm0, %v4510_v37  ;;  %413 = vmatprep.mubr.f32.mxu0 %v4510_v37  ;;  %v2761_v39 = vpack.c.bf16 %v3915_v6, %v3899_v1  ;;  %v2763_v40 = vpack.c.bf16 %v3912_v5, %v3905_v3  ;;  %s3712_s5 = smov 110   ;;  %s3713_s23 = smov 109   ;;  %vm304_vm1 = vcmask 1039360  }
  0x59   : > { %3080 = vrot.lane.b32.xlu0 %v3909_v4, %s3708_s19  ;;  %v3934_v11 = vpack.i.bf16 %v3918_v7, %v3915_v6  ;;  %v3937_v12 = vld [vmem:[%s3887_s9 + $0x50] sm:$0xff]  ;;  %v3943_v13 = vpack.i.bf16 %v3928_v10, %v3925_v9  ;;  %v3946_v14 = vld [vmem:[%s3887_s9 + $0x58] sm:$0xff]  ;;  %v3952_v16 = vld [vmem:[%s3887_s9 + $0x48] sm:$0xff]  ;;  %v2778_v38 = vpack.c.bf16 %v3918_v7, %v3902_v2  ;;  %s3714_s27 = smov 108   ;;  %s3715_s6 = smov 92   ;;  %vm345_vm2 = vcmask 523264  }
  0x5a   : > { %3090 = vrot.lane.b32.xlu1 %v3922_v8, %s3708_s19  ;;  %v3949_v15 = vld [vmem:[%s3887_s9 + $0x30] sm:$0xff]  ;;  %v3955_v17 = vld [vmem:[%s3887_s9 + $0x68] sm:$0xff]  ;;  %v3961_v19 = vld [vmem:[%s3887_s9 + $0x80] sm:$0xff]  ;;  %v3976_v23 = vpack.i.bf16 %v3946_v14, %v3937_v12  ;;  %v2781_v41 = vpack.c.bf16 %v3946_v14, %v3928_v10  ;;  %v2765_v42 = vpack.c.bf16 %v3937_v12, %v3925_v9  ;;  %s3716_s10 = smov 91   ;;  %v4522_v2 = vmov 0.0   ;;  %s3717_s11 = smov 90  }
  0x5b   : > { %v3958_v18 = vld [vmem:[%s3887_s9 + $0x70] sm:$0xff]  ;;  %v3964_v20 = vld [vmem:[%s3887_s9 + $0x88] sm:$0xff]  ;;  %v3967_v21 = vld [vmem:[%s3887_s9 + $0x60] sm:$0xff]  ;;  %v3988_v26 = vpack.i.bf16 %v3952_v16, %v3949_v15  ;;  %v4523_v9 = vpack.c.bf16 %v3952_v16, %v3949_v15  ;;  %vm684_vm3 = vcmask 1031168   ;;  %v4524_v12 = vpack.c.bf16 %v3961_v19, %v3955_v17  ;;  %s2300_s12 = sld [smem:[#allocation2]]  ;;  %s3004_s13 = smul.u32 3, %s3883_s26 }
  0x5c   : > { %v3970_v22 = vld [vmem:[%s3887_s9 + $0x78] sm:$0xff]  ;;  %v3982_v25 = vld [vmem:[%s3887_s9 + $0xa0] sm:$0xff]  ;;  %v3992_v27 = vpack.i.bf16 %v3958_v18, %v3955_v17  ;;  %v3996_v28 = vpack.i.bf16 %v3964_v20, %v3961_v19  ;;  %v4007_v31 = vld [vmem:[%s3887_s9 + $0xb0] sm:$0xff]  ;;  %vm922_vm4 = vcmask 900096   ;;  %vm1160_vm5 = vcmask 891904   ;;  %s3005_s28 = smul.u32 48, %s3764_s2 }
  0x5d   : > { %3085 = vrot.lane.b32.xlu0 %v3934_v11, %s3708_s19  ;;  %v3979_v24 = vld [vmem:[%s3887_s9 + $0x98] sm:$0xff]  ;;  %v4000_v29 = vpack.i.bf16 %v3970_v22, %v3967_v21  ;;  %v4015_v33 = vld [vmem:[%s3887_s9 + $0x90] sm:$0xff]  ;;  %v4018_v34 = vld [vmem:[%s3887_s9 + $0xa8] sm:$0xff]  ;;  %v4526_v17 = vpack.c.bf16 %v3970_v22, %v3967_v21  ;;  %vm1398_vm6 = vcmask 883712   ;;  %vm1636_vm7 = vcmask 752640   ;;  %s204_s29 = scalar_lea.vmem [#allocation8], %s3004_s13 }
  0x5e   : > { %3095 = vrot.lane.b32.xlu1 %v3943_v13, %s3708_s19  ;;  %v4004_v30 = vpack.i.bf16 %v3982_v25, %v3979_v24  ;;  %v4012_v32 = vld [vmem:[%s3887_s9 + $0xb8] sm:$0xff]  ;;  %v4028_v36 = vpack.i.bf16 %v4018_v34, %v4015_v33  ;;  %vm1874_vm8 = vcmask 744448   ;;  %vm2112_vm9 = vcmask 736256   ;;  %s2370_s30 = sshll.u32 %s204_s29, 4  ;;  %s4459_s7 = scalar_lea.hbm %s4506_s3, %s3005_s28  ;;  %s4461_s30 = int_to_ptr.vmem [resolvable:$true] %s2370_s30 }
  0x5f   : > { %v4024_v35 = vpack.i.bf16 %v4012_v32, %v4007_v31  ;;  %s2356_s8 = scalar_lea.sflag [#allocation5], %s3883_s26  ;;  %s3629_s9 = scalar_lea.vmem %s4461_s30, 48 }
  0x60   : > { %p3630_p11 = scmp.ne.s32.totalorder %s4461_s30, %s3629_s9  ;;  %p4530_p9 = scmp.ne.s32.totalorder %s4517_s22, 0 }
  0x61   : > { %3100 = vrot.lane.b32.xlu0 %v3976_v23, %s3708_s19  ;;  %s3719_s2 = smov [#allocation8]  }
  0x62   : > { %3105 = vrot.lane.b32.xlu1 %v3988_v26, %s3708_s19  ;;  %p3631_p0 = pnand %p3630_p11, %p4530_p9 }
  0x64   : > { %p3632_p10 = pneg %p3631_p0 }
  0x65   : > { %3110 = vrot.lane.b32.xlu0 %v3992_v27, %s3708_s19 }
  0x66   : > { %3115 = vrot.lane.b32.xlu1 %v3996_v28, %s3708_s19 }
  0x69   : > { %3120 = vrot.lane.b32.xlu0 %v4000_v29, %s3708_s19 }
  0x6a   : > { %3125 = vrot.lane.b32.xlu1 %v4004_v30, %s3708_s19 }
  0x6d   : > { %3130 = vrot.lane.b32.xlu0 %v4024_v35, %s3708_s19 }
  0x6e   : > { %3135 = vrot.lane.b32.xlu1 %v4028_v36, %s3708_s19  ;;  %s3633_s19 = sshll.u32 %s3719_s2, 4  ;;  %s3634_s19 = int_to_ptr.vmem [resolvable:$false] %s3633_s19 }
  0x6f   : > { %p3636_p13 = scmp.lt.s32.totalorder %s4461_s30, %s3634_s19 }
  0x71   : > { %3140 = vrot.lane.b32.xlu0 %v3909_v4, %s3711_s21 }
  0x72   : > { %3145 = vrot.lane.b32.xlu1 %v3934_v11, %s3711_s21 }
  0x75   : > { %3150 = vrot.lane.b32.xlu0 %v3922_v8, %s3711_s21 }
  0x76   : > { %3155 = vrot.lane.b32.xlu1 %v3943_v13, %s3711_s21 }
  0x79   : > { %3160 = vrot.lane.b32.xlu0 %v3976_v23, %s3711_s21 }
  0x7a   : > { %3165 = vrot.lane.b32.xlu1 %v3988_v26, %s3711_s21 }
  0x7d   : > { %3170 = vrot.lane.b32.xlu0 %v3992_v27, %s3711_s21 }
  0x7e   : > { %3175 = vrot.lane.b32.xlu1 %v3996_v28, %s3711_s21 }
  0x81   : > { %3180 = vrot.lane.b32.xlu0 %v4000_v29, %s3711_s21 }
  0x82   : > { %3185 = vrot.lane.b32.xlu1 %v4004_v30, %s3711_s21 }
  0x85   : > { %3190 = vrot.lane.b32.xlu0 %v4024_v35, %s3711_s21 }
  0x86   : > { %3195 = vrot.lane.b32.xlu1 %v4028_v36, %s3711_s21  ;;  %s3635_s21 = scalar_lea.vmem %s3634_s19, 96 }
  0x87   : > { %p3637_p3 = scmp.lt.s32.totalorder %s3635_s21, %s3629_s9 }
  0x89   : > { %3200 = vrot.lane.b32.xlu0 %v3909_v4, %s3712_s5  ;;  %p3638_p7 = por %p3637_p3, %p3636_p13 }
  0x8a   : > { %3205 = vrot.lane.b32.xlu1 %v3934_v11, %s3712_s5 }
  0x8b   : > { %p3639_p12 = pnand %p3638_p7, %p3632_p10 }
  0x8d   : > { %3210 = vrot.lane.b32.xlu0 %v3922_v8, %s3712_s5 }
  0x8e   : > { %3215 = vrot.lane.b32.xlu1 %v3943_v13, %s3712_s5 }
  0x91   : > { %3220 = vrot.lane.b32.xlu0 %v3976_v23, %s3712_s5 }
  0x92   : > { %3225 = vrot.lane.b32.xlu1 %v3988_v26, %s3712_s5 }
  0x95   : > { %3230 = vrot.lane.b32.xlu0 %v3992_v27, %s3712_s5 }
  0x96   : > { %3235 = vrot.lane.b32.xlu1 %v3996_v28, %s3712_s5 }
  0x99   : > { %3240 = vrot.lane.b32.xlu0 %v4000_v29, %s3712_s5 }
  0x9a   : > { %3245 = vrot.lane.b32.xlu1 %v4004_v30, %s3712_s5 }
  0x9d   : > { %3250 = vrot.lane.b32.xlu0 %v4024_v35, %s3712_s5 }
  0x9e   : > { %3255 = vrot.lane.b32.xlu1 %v4028_v36, %s3712_s5 }
  0xa1   : > { %3260 = vrot.lane.b32.xlu0 %v3909_v4, %s3713_s23 }
  0xa2   : > { %3265 = vrot.lane.b32.xlu1 %v3934_v11, %s3713_s23 }
  0xa5   : > { %3270 = vrot.lane.b32.xlu0 %v3922_v8, %s3713_s23 }
  0xa6   : > { %3275 = vrot.lane.b32.xlu1 %v3943_v13, %s3713_s23 }
  0xa9   : > { %3280 = vrot.lane.b32.xlu0 %v3976_v23, %s3713_s23 }
  0xaa   : > { %3285 = vrot.lane.b32.xlu1 %v3988_v26, %s3713_s23 }
  0xad   : > { %3290 = vrot.lane.b32.xlu0 %v3992_v27, %s3713_s23 }
  0xae   : > { %3295 = vrot.lane.b32.xlu1 %v3996_v28, %s3713_s23 }
  0xb1   : > { %3300 = vrot.lane.b32.xlu0 %v4000_v29, %s3713_s23 }
  0xb2   : > { %3305 = vrot.lane.b32.xlu1 %v4004_v30, %s3713_s23 }
  0xb5   : > { %3310 = vrot.lane.b32.xlu0 %v4024_v35, %s3713_s23 }
  0xb6   : > { %3315 = vrot.lane.b32.xlu1 %v4028_v36, %s3713_s23 }
  0xb9   : > { %3320 = vrot.lane.b32.xlu0 %v3909_v4, %s3714_s27 }
  0xba   : > { %3325 = vrot.lane.b32.xlu1 %v3934_v11, %s3714_s27 }
  0xbd   : > { %3330 = vrot.lane.b32.xlu0 %v3922_v8, %s3714_s27 }
  0xbe   : > { %3335 = vrot.lane.b32.xlu1 %v3943_v13, %s3714_s27 }
  0xc1   : > { %3340 = vrot.lane.b32.xlu0 %v3976_v23, %s3714_s27 }
  0xc2   : > { %3345 = vrot.lane.b32.xlu1 %v3988_v26, %s3714_s27 }
  0xc5   : > { %3350 = vrot.lane.b32.xlu0 %v3992_v27, %s3714_s27 }
  0xc6   : > { %3355 = vrot.lane.b32.xlu1 %v3996_v28, %s3714_s27 }
  0xc9   : > { %3360 = vrot.lane.b32.xlu0 %v4000_v29, %s3714_s27 }
  0xca   : > { %3365 = vrot.lane.b32.xlu1 %v4004_v30, %s3714_s27 }
  0xcb   : > { %v3081_v50 = vpop.permute.xlu0 %3080 }
  0xcc   : > { %v3091_v51 = vpop.permute.xlu1 %3090  ;;  %v3083_v52 = vunpack.i.h.bf16 %v3081_v50  ;;  %v3082_v53 = vunpack.i.l.bf16 %v3081_v50 }
  0xcd   : > { %v3092_v54 = vunpack.i.l.bf16 %v3091_v51  ;;  %3370 = vrot.lane.b32.xlu0 %v4024_v35, %s3714_s27  ;;  %v3093_v56 = vunpack.i.h.bf16 %v3091_v51 }
  0xce   : > { %3375 = vrot.lane.b32.xlu1 %v4028_v36, %s3714_s27  ;;  %v306_v61 = vsel %vm304_vm1, %v3082_v53, %v3083_v52 }
  0xcf   : > { %v3086_v55 = vpop.permute.xlu0 %3085  ;;  %v305_v62 = vsel %vm304_vm1, %v3092_v54, %v3082_v53 }
  0xd0   : > { %v3088_v57 = vunpack.i.h.bf16 %v3086_v55  ;;  %v3087_v58 = vunpack.i.l.bf16 %v3086_v55  ;;  %v3096_v59 = vpop.permute.xlu1 %3095 }
  0xd1   : > { %v3098_v60 = vunpack.i.h.bf16 %v3096_v59  ;;  %3380 = vrot.lane.b32.xlu0 %v3909_v4, %s3715_s6  ;;  %v3097_v63 = vunpack.i.l.bf16 %v3096_v59 }
  0xd2   : > { %3385 = vrot.lane.b32.xlu1 %v3934_v11, %s3715_s6  ;;  %v2750_v50 = vpack.c.bf16 %v3088_v57, %v3083_v52  ;;  %v308_v49 = vsel %vm304_vm1, %v3087_v58, %v3088_v57  ;;  %v307_v51 = vsel %vm304_vm1, %v3093_v56, %v3087_v58 }
  0xd3   : > { %v3101_v55 = vpop.permute.xlu0 %3100  ;;  %v2733_v47 = vpack.c.bf16 %v308_v49, %v306_v61  ;;  %v2735_v48 = vpack.c.bf16 %v307_v51, %v305_v62  ;;  %v310_v52 = vsel %vm304_vm1, %v3097_v63, %v3098_v60 }
  0xd4   : > { %v3103_v46 = vunpack.i.h.bf16 %v3101_v55  ;;  %v3102_v44 = vunpack.i.l.bf16 %v3101_v55  ;;  %v3106_v45 = vpop.permute.xlu1 %3105  ;;  %2751 = vmatpush3.bf16.msra.mxu1 %v2750_v50 }
  0xd5   : > { %v3108_v43 = vunpack.i.h.bf16 %v3106_v45  ;;  %v3107_v37 = vunpack.i.l.bf16 %v3106_v45  ;;  %2734 = vmatprep.subr.bf16.mxu0 %v2733_v47  ;;  %3390 = vrot.lane.b32.xlu0 %v3922_v8, %s3715_s6 }
  0xd6   : > { %v2753_v53 = vpack.c.bf16 %v3103_v46, %v3098_v60  ;;  %3395 = vrot.lane.b32.xlu1 %v3943_v13, %s3715_s6  ;;  %2736 = vmatpush1.bf16.msra.mxu0 %v2735_v48  ;;  %v312_v49 = vsel %vm304_vm1, %v3102_v44, %v3103_v46 }
  0xd7   : > { %v3111_v54 = vpop.permute.xlu0 %3110  ;;  %2752 = vmatprep.subr.bf16.mxu1 %v3707_v0  ;;  %v2737_v56 = vpack.c.bf16 %v312_v49, %v310_v52  ;;  %v309_v57 = vsel %vm304_vm1, %v3107_v37, %v3097_v63  ;;  %v311_v45 = vsel %vm304_vm1, %v3108_v43, %v3102_v44 }
  0xd8   : > { %v3113_v47 = vunpack.i.h.bf16 %v3111_v54  ;;  %v3112_v58 = vunpack.i.l.bf16 %v3111_v54  ;;  %v3116_v59 = vpop.permute.xlu1 %3115  ;;  %2754 = vmatpush3.bf16.msra.mxu1 %v2753_v53  ;;  %v2739_v61 = vpack.c.bf16 %v311_v45, %v309_v57 }
  0xd9   : > { %v3118_v62 = vunpack.i.h.bf16 %v3116_v59  ;;  %v3117_v50 = vunpack.i.l.bf16 %v3116_v59  ;;  %3400 = vrot.lane.b32.xlu0 %v3976_v23, %s3715_s6  ;;  %2738 = vmatprep.subr.bf16.mxu0 %v2737_v56 }
  0xda   : > { %3405 = vrot.lane.b32.xlu1 %v3988_v26, %s3715_s6  ;;  %2740 = vmatpush1.bf16.msra.mxu0 %v2739_v61  ;;  %v314_v46 = vsel %vm304_vm1, %v3112_v58, %v3113_v47 }
  0xdb   : > { %v2756_v37 = vpack.c.bf16 %v3118_v62, %v3113_v47  ;;  %v3121_v48 = vpop.permute.xlu0 %3120  ;;  %2755 = vmatprep.subr.bf16.mxu1 %v3707_v0  ;;  %v316_v43 = vsel %vm304_vm1, %v3117_v50, %v3118_v62 }
  0xdc   : > { %v3123_v44 = vunpack.i.h.bf16 %v3121_v48  ;;  %v3122_v60 = vunpack.i.l.bf16 %v3121_v48  ;;  %v3126_v63 = vpop.permute.xlu1 %3125  ;;  %v2741_v51 = vpack.c.bf16 %v316_v43, %v314_v46 }
  0xdd   : > { %2757 = vmatpush3.bf16.msra.mxu1 %v2756_v37  ;;  %3410 = vrot.lane.b32.xlu0 %v3992_v27, %s3715_s6  ;;  %v3128_v55 = vunpack.i.h.bf16 %v3126_v63  ;;  %v3127_v53 = vunpack.i.l.bf16 %v3126_v63  ;;  %v231_v63 = vld [vmem:[#allocation6 + $0x1] sm:$0x1] }
  0xde   : > { %3415 = vrot.lane.b32.xlu1 %v3996_v28, %s3715_s6  ;;  %2742 = vmatprep.subr.bf16.mxu0 %v2741_v51  ;;  %v313_v52 = vsel %vm304_vm1, %v3122_v60, %v3112_v58  ;;  %v315_v49 = vsel %vm304_vm1, %v3123_v44, %v3117_v50 }
  0xdf   : > { %v3131_v54 = vpop.permute.xlu0 %3130  ;;  %v2743_v56 = vpack.c.bf16 %v315_v49, %v313_v52  ;;  %2758 = vmatprep.subr.bf16.mxu1 %v3707_v0  ;;  %v318_v58 = vsel %vm304_vm1, %v3127_v53, %v3128_v55  ;;  %v4527_v52 = vpack.c.bf16 %v4007_v31, %v3979_v24 }
  0xe0   : > { %v3133_v57 = vunpack.i.h.bf16 %v3131_v54  ;;  %v3132_v45 = vunpack.i.l.bf16 %v3131_v54  ;;  %v3136_v47 = vpop.permute.xlu1 %3135 }
  0xe1   : > { %v3138_v59 = vunpack.i.h.bf16 %v3136_v47  ;;  %v3137_v61 = vunpack.i.l.bf16 %v3136_v47  ;;  %3420 = vrot.lane.b32.xlu0 %v4000_v29, %s3715_s6  ;;  %2744 = vmatpush1.bf16.msra.mxu0 %v2743_v56 }
  0xe2   : > { %v2759_v62 = vpack.c.bf16 %v3133_v57, %v3128_v55  ;;  %3425 = vrot.lane.b32.xlu1 %v4004_v30, %s3715_s6  ;;  %v320_v50 = vsel %vm304_vm1, %v3132_v45, %v3133_v57  ;;  %v4528_v57 = vpack.c.bf16 %v4012_v32, %v3982_v25  ;;  %v4529_v25 = vpack.c.bf16 %v4018_v34, %v4015_v33 }
  0xe3   : > { %v4154_v46 = vpop.permute.xlu0 %3140  ;;  %v2745_v37 = vpack.c.bf16 %v320_v50, %v318_v58  ;;  %v317_v48 = vsel %vm304_vm1, %v3137_v61, %v3127_v53  ;;  %v319_v43 = vsel %vm304_vm1, %v3138_v59, %v3132_v45  ;;  %v205_v45 = vld [vmem:[#allocation6] sm:$0x1] }
  0xe4   : > { %v3146_v44 = vpop.permute.xlu1 %3145  ;;  %2760 = vmatpush3.bf16.msra.mxu1 %v2759_v62  ;;  %v2747_v60 = vpack.c.bf16 %v319_v43, %v317_v48  ;;  %v3143_v3 = vunpack.i.h.bf16 %v4154_v46  ;;  %v3142_v5 = vunpack.i.l.bf16 %v4154_v46 }
  0xe5   : > { %3430 = vrot.lane.b32.xlu0 %v4024_v35, %s3715_s6  ;;  %2746 = vmatprep.subr.bf16.mxu0 %v2745_v37  ;;  %v3148_v6 = vunpack.i.h.bf16 %v3146_v44  ;;  %v3147_v7 = vunpack.i.l.bf16 %v3146_v44 }
  0xe6   : > { %3435 = vrot.lane.b32.xlu1 %v4028_v36, %s3715_s6  ;;  %2748 = vmatpush1.bf16.msra.mxu0 %v2747_v60  ;;  %v686_v19 = vsel %vm684_vm3, %v3142_v5, %v3143_v3 }
  0xe7   : > { %v3151_v51 = vpop.permute.xlu0 %3150  ;;  %2777 = vmatprep.subr.bf16.mxu1 %v3707_v0  ;;  %2579 = vmatmul.mubr.msk.f32.vlgmr.msra.gmra.mrb[0].mxu1 %vm345_vm2, %v231_v63  ;;  %v2806_v47 = vpack.c.bf16 %v3148_v6, %v3143_v3 }
  0xe8   : > { %v4164_v55 = vpop.permute.xlu1 %3155  ;;  %2779 = vmatpush3.bf16.msra.mxu1 %v2778_v38  ;;  %2762 = vmatprep.subr.bf16.mxu0 %v2761_v39  ;;  %v3153_v14 = vunpack.i.h.bf16 %v3151_v51  ;;  %v3152_v38 = vunpack.i.l.bf16 %v3151_v51 }
  0xe9   : > { %3440 = vrot.lane.b32.xlu0 %v3909_v4, %s3716_s10  ;;  %2457 = vmatmul.mubr.msk.f32.vlgmr.msra.gmra.mrb[0].mxu0 %vm345_vm2, %v231_v63 }
  0xea   : > { %3445 = vrot.lane.b32.xlu1 %v3934_v11, %s3716_s10  ;;  %2764 = vmatpush1.bf16.msra.mxu0 %v2763_v40  ;;  %v4525_v40 = vpack.c.bf16 %v3964_v20, %v3958_v18  ;;  %v688_v18 = vsel %vm684_vm3, %v3147_v7, %v3148_v6  ;;  %v3158_v20 = vunpack.i.h.bf16 %v4164_v55  ;;  %v685_v49 = vsel %vm684_vm3, %v3152_v38, %v3142_v5 }
  0xeb   : > { %v4180_v53 = vpop.permute.xlu0 %3160  ;;  %2780 = vmatprep.subr.bf16.mxu1 %v3707_v0  ;;  %2766 = vmatprep.subr.bf16.mxu0 %v2765_v42  ;;  %v687_v54 = vsel %vm684_vm3, %v3153_v14, %v3147_v7  ;;  %v2789_v59 = vpack.c.bf16 %v688_v18, %v686_v19 }
  0xec   : > { %v3166_v1 = vpop.permute.xlu1 %3165  ;;  %2782 = vmatpush3.bf16.msra.mxu1 %v2781_v41  ;;  %2597 = vmatprep.mubr.msk.f32.mxu1 %vm3709_vm0, %v4522_v2  ;;  %v3163_v15 = vunpack.i.h.bf16 %v4180_v53  ;;  %v3162_v16 = vunpack.i.l.bf16 %v4180_v53  ;;  %v3157_v41 = vunpack.i.l.bf16 %v4164_v55  ;;  %v2791_v32 = vpack.c.bf16 %v687_v54, %v685_v49 }
  0xed   : > { %3450 = vrot.lane.b32.xlu0 %v3922_v8, %s3716_s10  ;;  %2783 = vmatprep.subr.bf16.mxu1 %v3707_v0  ;;  %v3168_v56 = vunpack.i.h.bf16 %v3166_v1  ;;  %v3167_v21 = vunpack.i.l.bf16 %v3166_v1 }
  0xee   : > { %3455 = vrot.lane.b32.xlu1 %v3943_v13, %s3716_s10  ;;  %2768 = vmatpush1.bf16.msra.mxu0 %v4523_v9  ;;  %v692_v24 = vsel %vm684_vm3, %v3162_v16, %v3163_v15  ;;  %v690_v46 = vsel %vm684_vm3, %v3157_v41, %v3158_v20  ;;  %v2809_v51 = vpack.c.bf16 %v3163_v15, %v3158_v20 }
  0xef   : > { %v4201_v10 = vpop.permute.xlu0 %3170  ;;  %2770 = vmatprep.subr.bf16.mxu0 %v4524_v12  ;;  %557 = vmatprep.mubr.f32.mxu0 %v4522_v2  ;;  %v691_v37 = vsel %vm684_vm3, %v3168_v56, %v3162_v16  ;;  %v689_v48 = vsel %vm684_vm3, %v3167_v21, %v3157_v41  ;;  %v2793_v63 = vpack.c.bf16 %v692_v24, %v690_v46 }
  0xf0   : > { %v4207_v39 = vpop.permute.xlu1 %3175  ;;  %2785 = vmatpush3.bf16.msra.mxu1 %v4525_v40  ;;  %v3173_v31 = vunpack.i.h.bf16 %v4201_v10  ;;  %v3172_v61 = vunpack.i.l.bf16 %v4201_v10  ;;  %v2795_v1 = vpack.c.bf16 %v691_v37, %v689_v48 }
  0xf1   : > { %3460 = vrot.lane.b32.xlu0 %v3976_v23, %s3716_s10  ;;  %2786 = vmatprep.subr.bf16.mxu1 %v3707_v0  ;;  %v3178_v62 = vunpack.i.h.bf16 %v4207_v39  ;;  %v3177_v58 = vunpack.i.l.bf16 %v4207_v39 }
  0xf2   : > { %3465 = vrot.lane.b32.xlu1 %v3988_v26, %s3716_s10  ;;  %2772 = vmatpush1.bf16.msra.mxu0 %v4526_v17  ;;  %v694_v55 = vsel %vm684_vm3, %v3172_v61, %v3173_v31 }
  0xf3   : > { %v3181_v42 = vpop.permute.xlu0 %3180  ;;  %2774 = vmatprep.subr.bf16.mxu0 %v4527_v52  ;;  %v696_v53 = vsel %vm684_vm3, %v3177_v58, %v3178_v62  ;;  %v2812_v38 = vpack.c.bf16 %v3178_v62, %v3173_v31 }
  0xf4   : > { %v4231_v22 = vpop.permute.xlu1 %3185  ;;  %2788 = vmatpush3.bf16.msra.mxu1 %v4528_v57  ;;  %v3183_v43 = vunpack.i.h.bf16 %v3181_v42  ;;  %v3182_v44 = vunpack.i.l.bf16 %v3181_v42  ;;  %v2797_v39 = vpack.c.bf16 %v696_v53, %v694_v55 }
  0xf5   : > { %3470 = vrot.lane.b32.xlu0 %v3992_v27, %s3716_s10  ;;  %2805 = vmatprep.subr.bf16.mxu1 %v3707_v0  ;;  %v3188_v3 = vunpack.i.h.bf16 %v4231_v22  ;;  %v3187_v5 = vunpack.i.l.bf16 %v4231_v22 }
  0xf6   : > { %3475 = vrot.lane.b32.xlu1 %v3996_v28, %s3716_s10  ;;  %2776 = vmatpush1.bf16.msra.mxu0 %v4529_v25  ;;  %v693_v7 = vsel %vm684_vm3, %v3182_v44, %v3172_v61  ;;  %v695_v9 = vsel %vm684_vm3, %v3183_v43, %v3177_v58 }
  0xf7   : > { %v3191_v50 = vpop.permute.xlu0 %3190  ;;  %2790 = vmatprep.subr.bf16.mxu0 %v2789_v59  ;;  %2598 = vmatmul.mubr.msk.f32.vlgmr.msra.gmra.mrb[2].mxu1 %vm345_vm2, %v205_v45  ;;  %v2799_v18 = vpack.c.bf16 %v695_v9, %v693_v7  ;;  %v698_v41 = vsel %vm684_vm3, %v3187_v5, %v3188_v3 }
  0xf8   : > { %v3196_v60 = vpop.permute.xlu1 %3195  ;;  %2807 = vmatpush3.bf16.msra.mxu1 %v2806_v47  ;;  %2616 = vmatprep.mubr.msk.f32.mxu1 %vm3709_vm0, %v4522_v2  ;;  %v3193_v33 = vunpack.i.h.bf16 %v3191_v50  ;;  %v3192_v34 = vunpack.i.l.bf16 %v3191_v50 }
  0xf9   : > { %3480 = vrot.lane.b32.xlu0 %v4000_v29, %s3716_s10  ;;  %2459 = vmatmul.mubr.msk.f32.vlgmr.msra.gmra.mrb[0].mxu0 %vm345_vm2, %v205_v45  ;;  %v3198_v10 = vunpack.i.h.bf16 %v3196_v60  ;;  %v3197_v12 = vunpack.i.l.bf16 %v3196_v60 }
  0xfa   : > { %3485 = vrot.lane.b32.xlu1 %v4004_v30, %s3716_s10  ;;  %2792 = vmatpush1.bf16.msra.mxu0 %v2791_v32  ;;  %v700_v40 = vsel %vm684_vm3, %v3192_v34, %v3193_v33  ;;  %v2815_v22 = vpack.c.bf16 %v3193_v33, %v3188_v3  ;;  %v635_v32 = vld [vmem:[#allocation6 + $0x2] sm:$0x1] }
  0xfb   : > { %v3201_v6 = vpop.permute.xlu0 %3200  ;;  %2794 = vmatprep.subr.bf16.mxu0 %v2793_v63  ;;  %2808 = vmatprep.subr.bf16.mxu1 %v3707_v0  ;;  %v699_v42 = vsel %vm684_vm3, %v3198_v10, %v3192_v34  ;;  %v697_v52 = vsel %vm684_vm3, %v3197_v12, %v3187_v5  ;;  %v2801_v21 = vpack.c.bf16 %v700_v40, %v698_v41 }
  0xfc   : > { %v3206_v14 = vpop.permute.xlu1 %3205  ;;  %2810 = vmatpush3.bf16.msra.mxu1 %v2809_v51  ;;  %792 = vmatprep.mubr.f32.mxu0 %v4522_v2  ;;  %v3203_v15 = vunpack.i.h.bf16 %v3201_v6  ;;  %v3202_v16 = vunpack.i.l.bf16 %v3201_v6  ;;  %v2803_v47 = vpack.c.bf16 %v699_v42, %v697_v52 }
  0xfd   : > { %3490 = vrot.lane.b32.xlu0 %v4024_v35, %s3716_s10  ;;  %2811 = vmatprep.subr.bf16.mxu1 %v3707_v0  ;;  %v3208_v17 = vunpack.i.h.bf16 %v3206_v14  ;;  %v3207_v19 = vunpack.i.l.bf16 %v3206_v14 }
  0xfe   : > { %3495 = vrot.lane.b32.xlu1 %v4028_v36, %s3716_s10  ;;  %2796 = vmatpush1.bf16.msra.mxu0 %v2795_v1  ;;  %v924_v57 = vsel %vm922_vm4, %v3202_v16, %v3203_v15 }
  0xff   : > { %v3211_v20 = vpop.permute.xlu0 %3210  ;;  %2798 = vmatprep.subr.bf16.mxu0 %v2797_v39  ;;  %v926_v45 = vsel %vm922_vm4, %v3207_v19, %v3208_v17  ;;  %v2834_v37 = vpack.c.bf16 %v3208_v17, %v3203_v15 }
 0x100   : > { %v3213_v49 = vunpack.i.h.bf16 %v3211_v20  ;;  %v3212_v54 = vunpack.i.l.bf16 %v3211_v20  ;;  %v3216_v56 = vpop.permute.xlu1 %3215  ;;  %2813 = vmatpush3.bf16.msra.mxu1 %v2812_v38  ;;  %v2817_v46 = vpack.c.bf16 %v926_v45, %v924_v57  ;;  %v873_v45 = vld [vmem:[#allocation6 + $0x3] sm:$0x1] }
 0x101   : > { %3500 = vrot.lane.b32.xlu0 %v3909_v4, %s3717_s11  ;;  %2814 = vmatprep.subr.bf16.mxu1 %v3707_v0  ;;  %v3218_v59 = vunpack.i.h.bf16 %v3216_v56  ;;  %v3217_v24 = vunpack.i.l.bf16 %v3216_v56 }
 0x102   : > { %3505 = vrot.lane.b32.xlu1 %v3934_v11, %s3717_s11  ;;  %2800 = vmatpush1.bf16.msra.mxu0 %v2799_v18  ;;  %v923_v61 = vsel %vm922_vm4, %v3212_v54, %v3202_v16  ;;  %v925_v4 = vsel %vm922_vm4, %v3213_v49, %v3207_v19 }
 0x103   : > { %v3221_v31 = vpop.permute.xlu0 %3220  ;;  %2802 = vmatprep.subr.bf16.mxu0 %v2801_v21  ;;  %v2819_v43 = vpack.c.bf16 %v925_v4, %v923_v61  ;;  %v928_v63 = vsel %vm922_vm4, %v3217_v24, %v3218_v59 }
 0x104   : > { %v3223_v62 = vunpack.i.h.bf16 %v3221_v31  ;;  %v3222_v58 = vunpack.i.l.bf16 %v3221_v31  ;;  %v3226_v25 = vpop.permute.xlu1 %3225  ;;  %2816 = vmatpush3.bf16.msra.mxu1 %v2815_v22 }
 0x105   : > { %v3228_v11 = vunpack.i.h.bf16 %v3226_v25  ;;  %v3227_v50 = vunpack.i.l.bf16 %v3226_v25  ;;  %3510 = vrot.lane.b32.xlu0 %v3922_v8, %s3717_s11  ;;  %2833 = vmatprep.subr.bf16.mxu1 %v3707_v0 }
 0x106   : > { %3515 = vrot.lane.b32.xlu1 %v3943_v13, %s3717_s11  ;;  %2804 = vmatpush1.bf16.msra.mxu0 %v2803_v47  ;;  %v930_v48 = vsel %vm922_vm4, %v3222_v58, %v3223_v62  ;;  %v2837_v1 = vpack.c.bf16 %v3223_v62, %v3218_v59 }
 0x107   : > { %v3231_v44 = vpop.permute.xlu0 %3230  ;;  %2818 = vmatprep.subr.bf16.mxu0 %v2817_v46  ;;  %2617 = vmatmul.mubr.msk.f32.vlgmr.msra.gmra.mrb[4].mxu1 %vm345_vm2, %v635_v32  ;;  %v929_v60 = vsel %vm922_vm4, %v3228_v11, %v3222_v58  ;;  %v927_v13 = vsel %vm922_vm4, %v3227_v50, %v3217_v24  ;;  %v2821_v53 = vpack.c.bf16 %v930_v48, %v928_v63 }
 0x108   : > { %v3233_v33 = vunpack.i.h.bf16 %v3231_v44  ;;  %v3232_v34 = vunpack.i.l.bf16 %v3231_v44  ;;  %v3236_v8 = vpop.permute.xlu1 %3235  ;;  %2835 = vmatpush3.bf16.msra.mxu1 %v2834_v37  ;;  %2635 = vmatprep.mubr.msk.f32.mxu1 %vm3709_vm0, %v4522_v2  ;;  %v2823_v7 = vpack.c.bf16 %v929_v60, %v927_v13 }
 0x109   : > { %v3238_v51 = vunpack.i.h.bf16 %v3236_v8  ;;  %v3237_v55 = vunpack.i.l.bf16 %v3236_v8  ;;  %3520 = vrot.lane.b32.xlu0 %v3976_v23, %s3717_s11  ;;  %2461 = vmatmul.mubr.msk.f32.vlgmr.msra.gmra.mrb[0].mxu0 %vm345_vm2, %v635_v32 }
 0x10a   : > { %3525 = vrot.lane.b32.xlu1 %v3988_v26, %s3717_s11  ;;  %2820 = vmatpush1.bf16.msra.mxu0 %v2819_v43  ;;  %v932_v3 = vsel %vm922_vm4, %v3232_v34, %v3233_v33 }
 0x10b   : > { %v3241_v5 = vpop.permute.xlu0 %3240  ;;  %2822 = vmatprep.subr.bf16.mxu0 %v2821_v53  ;;  %2836 = vmatprep.subr.bf16.mxu1 %v3707_v0  ;;  %v934_v6 = vsel %vm922_vm4, %v3237_v55, %v3238_v51  ;;  %v2840_v12 = vpack.c.bf16 %v3238_v51, %v3233_v33 }
 0x10c   : > { %v3243_v9 = vunpack.i.h.bf16 %v3241_v5  ;;  %v3242_v10 = vunpack.i.l.bf16 %v3241_v5  ;;  %v3246_v23 = vpop.permute.xlu1 %3245  ;;  %2838 = vmatpush3.bf16.msra.mxu1 %v2837_v1  ;;  %1030 = vmatprep.mubr.f32.mxu0 %v4522_v2  ;;  %v2825_v26 = vpack.c.bf16 %v934_v6, %v932_v3 }
 0x10d   : > { %3530 = vrot.lane.b32.xlu0 %v3992_v27, %s3717_s11  ;;  %2839 = vmatprep.subr.bf16.mxu1 %v3707_v0  ;;  %v3248_v39 = vunpack.i.h.bf16 %v3246_v23  ;;  %v3247_v40 = vunpack.i.l.bf16 %v3246_v23 }
 0x10e   : > { %v931_v14 = vsel %vm922_vm4, %v3242_v10, %v3232_v34  ;;  %v933_v38 = vsel %vm922_vm4, %v3243_v9, %v3237_v55  ;;  %3535 = vrot.lane.b32.xlu1 %v3996_v28, %s3717_s11  ;;  %2824 = vmatpush1.bf16.msra.mxu0 %v2823_v7 }
 0x10f   : > { %v2827_v15 = vpack.c.bf16 %v933_v38, %v931_v14  ;;  %v3251_v16 = vpop.permute.xlu0 %3250  ;;  %2826 = vmatprep.subr.bf16.mxu0 %v2825_v26  ;;  %v936_v28 = vsel %vm922_vm4, %v3247_v40, %v3248_v39 }
 0x110   : > { %v3253_v17 = vunpack.i.h.bf16 %v3251_v16  ;;  %v3252_v19 = vunpack.i.l.bf16 %v3251_v16  ;;  %v3256_v18 = vpop.permute.xlu1 %3255  ;;  %2841 = vmatpush3.bf16.msra.mxu1 %v2840_v12 }
 0x111   : > { %v3258_v27 = vunpack.i.h.bf16 %v3256_v18  ;;  %v3257_v20 = vunpack.i.l.bf16 %v3256_v18  ;;  %3540 = vrot.lane.b32.xlu0 %v4000_v29, %s3717_s11  ;;  %2842 = vmatprep.subr.bf16.mxu1 %v3707_v0 }
 0x112   : > { %v2843_v41 = vpack.c.bf16 %v3253_v17, %v3248_v39  ;;  %3545 = vrot.lane.b32.xlu1 %v4004_v30, %s3717_s11  ;;  %2828 = vmatpush1.bf16.msra.mxu0 %v2827_v15  ;;  %v938_v42 = vsel %vm922_vm4, %v3252_v19, %v3253_v17 }
 0x113   : > { %v937_v52 = vsel %vm922_vm4, %v3258_v27, %v3252_v19  ;;  %v935_v49 = vsel %vm922_vm4, %v3257_v20, %v3247_v40  ;;  %v3261_v54 = vpop.permute.xlu0 %3260  ;;  %v2829_v56 = vpack.c.bf16 %v938_v42, %v936_v28 }
 0x114   : > { %v2831_v21 = vpack.c.bf16 %v937_v52, %v935_v49  ;;  %v3263_v29 = vunpack.i.h.bf16 %v3261_v54  ;;  %v3262_v22 = vunpack.i.l.bf16 %v3261_v54  ;;  %v3266_v57 = vpop.permute.xlu1 %3265  ;;  %2844 = vmatpush3.bf16.msra.mxu1 %v2843_v41 }
 0x115   : > { %v3268_v47 = vunpack.i.h.bf16 %v3266_v57  ;;  %v3267_v30 = vunpack.i.l.bf16 %v3266_v57  ;;  %3550 = vrot.lane.b32.xlu0 %v4024_v35, %s3717_s11  ;;  %2830 = vmatprep.subr.bf16.mxu0 %v2829_v56 }
 0x116   : > { %3555 = vrot.lane.b32.xlu1 %v4028_v36, %s3717_s11  ;;  %2832 = vmatpush1.bf16.msra.mxu0 %v2831_v21  ;;  %v1162_v59 = vsel %vm1160_vm5, %v3262_v22, %v3263_v29 }
 0x117   : > { %v2862_v24 = vpack.c.bf16 %v3268_v47, %v3263_v29  ;;  %v3271_v31 = vpop.permute.xlu0 %3270  ;;  %2636 = vmatmul.mubr.msk.f32.vlgmr.msra.gmra.mrb[6].mxu1 %vm345_vm2, %v873_v45  ;;  %2861 = vmatprep.subr.bf16.mxu1 %v3707_v0  ;;  %v1164_v61 = vsel %vm1160_vm5, %v3267_v30, %v3268_v47 }
 0x118   : > { %v3273_v4 = vunpack.i.h.bf16 %v3271_v31  ;;  %v3272_v62 = vunpack.i.l.bf16 %v3271_v31  ;;  %v3276_v58 = vpop.permute.xlu1 %3275  ;;  %v2845_v25 = vpack.c.bf16 %v1164_v61, %v1162_v59  ;;  %2654 = vmatprep.mubr.msk.f32.mxu1 %vm3709_vm0, %v4522_v2  ;;  %v1111_v59 = vld [vmem:[#allocation6 + $0x4] sm:$0x1] }
 0x119   : > { %2863 = vmatpush3.bf16.msra.mxu1 %v2862_v24  ;;  %2463 = vmatmul.mubr.msk.f32.vlgmr.msra.gmra.mrb[0].mxu0 %vm345_vm2, %v873_v45  ;;  %v3278_v32 = vunpack.i.h.bf16 %v3276_v58  ;;  %v3277_v11 = vunpack.i.l.bf16 %v3276_v58 }
 0x11a   : > { %v1161_v35 = vsel %vm1160_vm5, %v3272_v62, %v3262_v22  ;;  %v1163_v36 = vsel %vm1160_vm5, %v3273_v4, %v3267_v30  ;;  %2846 = vmatprep.subr.bf16.mxu0 %v2845_v25  ;;  %2864 = vmatprep.subr.bf16.mxu1 %v3707_v0 }
 0x11b   : > { %v2847_v50 = vpack.c.bf16 %v1163_v36, %v1161_v35  ;;  %v3281_v46 = vpop.permute.xlu0 %3280  ;;  %1268 = vmatprep.mubr.f32.mxu0 %v4522_v2  ;;  %v1166_v34 = vsel %vm1160_vm5, %v3277_v11, %v3278_v32 }
 0x11c   : > { %v3283_v37 = vunpack.i.h.bf16 %v3281_v46  ;;  %v3282_v48 = vunpack.i.l.bf16 %v3281_v46  ;;  %v3286_v43 = vpop.permute.xlu1 %3285 }
 0x11d   : > { %v3288_v44 = vunpack.i.h.bf16 %v3286_v43  ;;  %v3287_v60 = vunpack.i.l.bf16 %v3286_v43  ;;  %2848 = vmatpush1.bf16.msra.mxu0 %v2847_v50 }
 0x11e   : > { %v2865_v33 = vpack.c.bf16 %v3283_v37, %v3278_v32  ;;  %v1168_v8 = vsel %vm1160_vm5, %v3282_v48, %v3283_v37 }
 0x11f   : > { %v1167_v63 = vsel %vm1160_vm5, %v3288_v44, %v3282_v48  ;;  %v1165_v13 = vsel %vm1160_vm5, %v3287_v60, %v3277_v11  ;;  %v3291_v51 = vpop.permute.xlu0 %3290  ;;  %v2849_v55 = vpack.c.bf16 %v1168_v8, %v1166_v34 }
 0x120   : > { %v2851_v53 = vpack.c.bf16 %v1167_v63, %v1165_v13  ;;  %v3293_v1 = vunpack.i.h.bf16 %v3291_v51  ;;  %v3292_v3 = vunpack.i.l.bf16 %v3291_v51  ;;  %v3296_v5 = vpop.permute.xlu1 %3295  ;;  %2866 = vmatpush3.bf16.msra.mxu1 %v2865_v33 }
 0x121   : > { %v3298_v6 = vunpack.i.h.bf16 %v3296_v5  ;;  %v3297_v7 = vunpack.i.l.bf16 %v3296_v5  ;;  %2850 = vmatprep.subr.bf16.mxu0 %v2849_v55  ;;  %2867 = vmatprep.subr.bf16.mxu1 %v3707_v0 }
 0x122   : > { %2852 = vmatpush1.bf16.msra.mxu0 %v2851_v53  ;;  %v1170_v9 = vsel %vm1160_vm5, %v3292_v3, %v3293_v1 }
 0x123   : > { %v2868_v10 = vpack.c.bf16 %v3298_v6, %v3293_v1  ;;  %v3301_v23 = vpop.permute.xlu0 %3300  ;;  %v1172_v12 = vsel %vm1160_vm5, %v3297_v7, %v3298_v6 }
 0x124   : > { %v3303_v26 = vunpack.i.h.bf16 %v3301_v23  ;;  %v3302_v14 = vunpack.i.l.bf16 %v3301_v23  ;;  %v3306_v38 = vpop.permute.xlu1 %3305  ;;  %v2853_v39 = vpack.c.bf16 %v1172_v12, %v1170_v9 }
 0x125   : > { %2869 = vmatpush3.bf16.msra.mxu1 %v2868_v10  ;;  %v3308_v16 = vunpack.i.h.bf16 %v3306_v38  ;;  %v3307_v17 = vunpack.i.l.bf16 %v3306_v38 }
 0x126   : > { %v1169_v40 = vsel %vm1160_vm5, %v3302_v14, %v3292_v3  ;;  %v1171_v15 = vsel %vm1160_vm5, %v3303_v26, %v3297_v7  ;;  %2854 = vmatprep.subr.bf16.mxu0 %v2853_v39  ;;  %2870 = vmatprep.subr.bf16.mxu1 %v3707_v0 }
 0x127   : > { %v2855_v19 = vpack.c.bf16 %v1171_v15, %v1169_v40  ;;  %v3311_v18 = vpop.permute.xlu0 %3310  ;;  %v1174_v49 = vsel %vm1160_vm5, %v3307_v17, %v3308_v16 }
 0x128   : > { %v3313_v27 = vunpack.i.h.bf16 %v3311_v18  ;;  %v3312_v20 = vunpack.i.l.bf16 %v3311_v18  ;;  %v3316_v41 = vpop.permute.xlu1 %3315 }
 0x129   : > { %v3318_v28 = vunpack.i.h.bf16 %v3316_v41  ;;  %v3317_v42 = vunpack.i.l.bf16 %v3316_v41  ;;  %2856 = vmatpush1.bf16.msra.mxu0 %v2855_v19 }
 0x12a   : > { %v2871_v52 = vpack.c.bf16 %v3313_v27, %v3308_v16  ;;  %v1176_v54 = vsel %vm1160_vm5, %v3312_v20, %v3313_v27 }
 0x12b   : > { %v1175_v56 = vsel %vm1160_vm5, %v3318_v28, %v3312_v20  ;;  %v1173_v21 = vsel %vm1160_vm5, %v3317_v42, %v3307_v17  ;;  %v3321_v29 = vpop.permute.xlu0 %3320  ;;  %v2857_v22 = vpack.c.bf16 %v1176_v54, %v1174_v49 }
 0x12c   : > { %v2859_v57 = vpack.c.bf16 %v1175_v56, %v1173_v21  ;;  %v3323_v45 = vunpack.i.h.bf16 %v3321_v29  ;;  %v3322_v47 = vunpack.i.l.bf16 %v3321_v29  ;;  %v3326_v30 = vpop.permute.xlu1 %3325  ;;  %2872 = vmatpush3.bf16.msra.mxu1 %v2871_v52 }
 0x12d   : > { %v3328_v24 = vunpack.i.h.bf16 %v3326_v30  ;;  %v3327_v31 = vunpack.i.l.bf16 %v3326_v30  ;;  %2858 = vmatprep.subr.bf16.mxu0 %v2857_v22  ;;  %2889 = vmatprep.subr.bf16.mxu1 %v3707_v0 }
 0x12e   : > { %2860 = vmatpush1.bf16.msra.mxu0 %v2859_v57  ;;  %v1400_v61 = vsel %vm1398_vm6, %v3322_v47, %v3323_v45 }
 0x12f   : > { %v2890_v4 = vpack.c.bf16 %v3328_v24, %v3323_v45  ;;  %v3331_v62 = vpop.permute.xlu0 %3330  ;;  %2655 = vmatmul.mubr.msk.f32.vlgmr.msra.gmra.mrb[8].mxu1 %vm345_vm2, %v1111_v59  ;;  %v1402_v58 = vsel %vm1398_vm6, %v3327_v31, %v3328_v24 }
 0x130   : > { %v3333_v25 = vunpack.i.h.bf16 %v3331_v62  ;;  %v3332_v35 = vunpack.i.l.bf16 %v3331_v62  ;;  %v3336_v36 = vpop.permute.xlu1 %3335  ;;  %v2873_v32 = vpack.c.bf16 %v1402_v58, %v1400_v61  ;;  %2673 = vmatprep.mubr.msk.f32.mxu1 %vm3709_vm0, %v4522_v2  ;;  %v1349_v61 = vld [vmem:[#allocation6 + $0x5] sm:$0x1] }
 0x131   : > { %2891 = vmatpush3.bf16.msra.mxu1 %v2890_v4  ;;  %2465 = vmatmul.mubr.msk.f32.vlgmr.msra.gmra.mrb[0].mxu0 %vm345_vm2, %v1111_v59  ;;  %v3338_v46 = vunpack.i.h.bf16 %v3336_v36  ;;  %v3337_v37 = vunpack.i.l.bf16 %v3336_v36 }
 0x132   : > { %v1399_v11 = vsel %vm1398_vm6, %v3332_v35, %v3322_v47  ;;  %v1401_v50 = vsel %vm1398_vm6, %v3333_v25, %v3327_v31  ;;  %2874 = vmatprep.subr.bf16.mxu0 %v2873_v32  ;;  %2892 = vmatprep.subr.bf16.mxu1 %v3707_v0 }
 0x133   : > { %v2875_v48 = vpack.c.bf16 %v1401_v50, %v1399_v11  ;;  %v3341_v43 = vpop.permute.xlu0 %3340  ;;  %1506 = vmatprep.mubr.f32.mxu0 %v4522_v2  ;;  %v1404_v13 = vsel %vm1398_vm6, %v3337_v37, %v3338_v46 }
 0x134   : > { %v3343_v44 = vunpack.i.h.bf16 %v3341_v43  ;;  %v3342_v60 = vunpack.i.l.bf16 %v3341_v43  ;;  %v3346_v33 = vpop.permute.xlu1 %3345 }
 0x135   : > { %v3348_v34 = vunpack.i.h.bf16 %v3346_v33  ;;  %v3347_v8 = vunpack.i.l.bf16 %v3346_v33  ;;  %2876 = vmatpush1.bf16.msra.mxu0 %v2875_v48 }
 0x136   : > { %v2893_v63 = vpack.c.bf16 %v3343_v44, %v3338_v46  ;;  %v1406_v51 = vsel %vm1398_vm6, %v3342_v60, %v3343_v44 }
 0x137   : > { %v1405_v55 = vsel %vm1398_vm6, %v3348_v34, %v3342_v60  ;;  %v1403_v53 = vsel %vm1398_vm6, %v3347_v8, %v3337_v37  ;;  %v3351_v1 = vpop.permute.xlu0 %3350  ;;  %v2877_v3 = vpack.c.bf16 %v1406_v51, %v1404_v13 }
 0x138   : > { %v2879_v5 = vpack.c.bf16 %v1405_v55, %v1403_v53  ;;  %v3353_v6 = vunpack.i.h.bf16 %v3351_v1  ;;  %v3352_v7 = vunpack.i.l.bf16 %v3351_v1  ;;  %v3356_v9 = vpop.permute.xlu1 %3355  ;;  %2894 = vmatpush3.bf16.msra.mxu1 %v2893_v63 }
 0x139   : > { %v3358_v10 = vunpack.i.h.bf16 %v3356_v9  ;;  %v3357_v23 = vunpack.i.l.bf16 %v3356_v9  ;;  %2878 = vmatprep.subr.bf16.mxu0 %v2877_v3  ;;  %2895 = vmatprep.subr.bf16.mxu1 %v3707_v0 }
 0x13a   : > { %2880 = vmatpush1.bf16.msra.mxu0 %v2879_v5  ;;  %v1408_v12 = vsel %vm1398_vm6, %v3352_v7, %v3353_v6 }
 0x13b   : > { %v2896_v26 = vpack.c.bf16 %v3358_v10, %v3353_v6  ;;  %v3361_v14 = vpop.permute.xlu0 %3360  ;;  %v1410_v38 = vsel %vm1398_vm6, %v3357_v23, %v3358_v10 }
 0x13c   : > { %v3363_v39 = vunpack.i.h.bf16 %v3361_v14  ;;  %v3362_v40 = vunpack.i.l.bf16 %v3361_v14  ;;  %v3366_v15 = vpop.permute.xlu1 %3365  ;;  %v2881_v16 = vpack.c.bf16 %v1410_v38, %v1408_v12 }
 0x13d   : > { %2897 = vmatpush3.bf16.msra.mxu1 %v2896_v26  ;;  %v3368_v18 = vunpack.i.h.bf16 %v3366_v15  ;;  %v3367_v27 = vunpack.i.l.bf16 %v3366_v15 }
 0x13e   : > { %v1407_v17 = vsel %vm1398_vm6, %v3362_v40, %v3352_v7  ;;  %v1409_v19 = vsel %vm1398_vm6, %v3363_v39, %v3357_v23  ;;  %2882 = vmatprep.subr.bf16.mxu0 %v2881_v16  ;;  %2898 = vmatprep.subr.bf16.mxu1 %v3707_v0 }
 0x13f   : > { %v2883_v20 = vpack.c.bf16 %v1409_v19, %v1407_v17  ;;  %v3371_v41 = vpop.permute.xlu0 %3370  ;;  %v1412_v21 = vsel %vm1398_vm6, %v3367_v27, %v3368_v18 }
 0x140   : > { %v3373_v28 = vunpack.i.h.bf16 %v3371_v41  ;;  %v3372_v42 = vunpack.i.l.bf16 %v3371_v41  ;;  %v3376_v52 = vpop.permute.xlu1 %3375 }
 0x141   : > { %v3378_v49 = vunpack.i.h.bf16 %v3376_v52  ;;  %v3377_v54 = vunpack.i.l.bf16 %v3376_v52  ;;  %2884 = vmatpush1.bf16.msra.mxu0 %v2883_v20 }
 0x142   : > { %v2899_v56 = vpack.c.bf16 %v3373_v28, %v3368_v18  ;;  %v1414_v29 = vsel %vm1398_vm6, %v3372_v42, %v3373_v28 }
 0x143   : > { %v1413_v22 = vsel %vm1398_vm6, %v3378_v49, %v3372_v42  ;;  %v1411_v57 = vsel %vm1398_vm6, %v3377_v54, %v3367_v27  ;;  %v3381_v45 = vpop.permute.xlu0 %3380  ;;  %v2885_v47 = vpack.c.bf16 %v1414_v29, %v1412_v21 }
 0x144   : > { %v2887_v30 = vpack.c.bf16 %v1413_v22, %v1411_v57  ;;  %v3383_v59 = vunpack.i.h.bf16 %v3381_v45  ;;  %v3382_v24 = vunpack.i.l.bf16 %v3381_v45  ;;  %v3386_v31 = vpop.permute.xlu1 %3385  ;;  %2900 = vmatpush3.bf16.msra.mxu1 %v2899_v56 }
 0x145   : > { %v3388_v4 = vunpack.i.h.bf16 %v3386_v31  ;;  %v3387_v62 = vunpack.i.l.bf16 %v3386_v31  ;;  %2886 = vmatprep.subr.bf16.mxu0 %v2885_v47  ;;  %2917 = vmatprep.subr.bf16.mxu1 %v3707_v0 }
 0x146   : > { %2888 = vmatpush1.bf16.msra.mxu0 %v2887_v30  ;;  %v1638_v58 = vsel %vm1636_vm7, %v3382_v24, %v3383_v59 }
 0x147   : > { %v2918_v25 = vpack.c.bf16 %v3388_v4, %v3383_v59  ;;  %v3391_v35 = vpop.permute.xlu0 %3390  ;;  %2674 = vmatmul.mubr.msk.f32.vlgmr.msra.gmra.mrb[10].mxu1 %vm345_vm2, %v1349_v61  ;;  %v1640_v36 = vsel %vm1636_vm7, %v3387_v62, %v3388_v4 }
 0x148   : > { %v3393_v32 = vunpack.i.h.bf16 %v3391_v35  ;;  %v3392_v11 = vunpack.i.l.bf16 %v3391_v35  ;;  %v3396_v50 = vpop.permute.xlu1 %3395  ;;  %v2901_v46 = vpack.c.bf16 %v1640_v36, %v1638_v58  ;;  %2692 = vmatprep.mubr.msk.f32.mxu1 %vm3709_vm0, %v4522_v2  ;;  %v1587_v58 = vld [vmem:[#allocation6 + $0x6] sm:$0x1] }
 0x149   : > { %2919 = vmatpush3.bf16.msra.mxu1 %v2918_v25  ;;  %2467 = vmatmul.mubr.msk.f32.vlgmr.msra.gmra.mrb[0].mxu0 %vm345_vm2, %v1349_v61  ;;  %v3398_v43 = vunpack.i.h.bf16 %v3396_v50  ;;  %v3397_v44 = vunpack.i.l.bf16 %v3396_v50 }
 0x14a   : > { %v1637_v37 = vsel %vm1636_vm7, %v3392_v11, %v3382_v24  ;;  %v1639_v48 = vsel %vm1636_vm7, %v3393_v32, %v3387_v62  ;;  %2902 = vmatprep.subr.bf16.mxu0 %v2901_v46  ;;  %2920 = vmatprep.subr.bf16.mxu1 %v3707_v0 }
 0x14b   : > { %v2903_v60 = vpack.c.bf16 %v1639_v48, %v1637_v37  ;;  %v3401_v33 = vpop.permute.xlu0 %3400  ;;  %1744 = vmatprep.mubr.f32.mxu0 %v4522_v2  ;;  %v1642_v53 = vsel %vm1636_vm7, %v3397_v44, %v3398_v43 }
 0x14c   : > { %v3403_v34 = vunpack.i.h.bf16 %v3401_v33  ;;  %v3402_v8 = vunpack.i.l.bf16 %v3401_v33  ;;  %v3406_v63 = vpop.permute.xlu1 %3405 }
 0x14d   : > { %v3408_v13 = vunpack.i.h.bf16 %v3406_v63  ;;  %v3407_v51 = vunpack.i.l.bf16 %v3406_v63  ;;  %2904 = vmatpush1.bf16.msra.mxu0 %v2903_v60 }
 0x14e   : > { %v2921_v55 = vpack.c.bf16 %v3403_v34, %v3398_v43  ;;  %v1644_v1 = vsel %vm1636_vm7, %v3402_v8, %v3403_v34 }
 0x14f   : > { %v1643_v3 = vsel %vm1636_vm7, %v3408_v13, %v3402_v8  ;;  %v1641_v5 = vsel %vm1636_vm7, %v3407_v51, %v3397_v44  ;;  %v3411_v6 = vpop.permute.xlu0 %3410  ;;  %v2905_v7 = vpack.c.bf16 %v1644_v1, %v1642_v53 }
 0x150   : > { %v2907_v9 = vpack.c.bf16 %v1643_v3, %v1641_v5  ;;  %v3413_v10 = vunpack.i.h.bf16 %v3411_v6  ;;  %v3412_v23 = vunpack.i.l.bf16 %v3411_v6  ;;  %v3416_v12 = vpop.permute.xlu1 %3415  ;;  %2922 = vmatpush3.bf16.msra.mxu1 %v2921_v55 }
 0x151   : > { %v3418_v26 = vunpack.i.h.bf16 %v3416_v12  ;;  %v3417_v14 = vunpack.i.l.bf16 %v3416_v12  ;;  %2906 = vmatprep.subr.bf16.mxu0 %v2905_v7  ;;  %2923 = vmatprep.subr.bf16.mxu1 %v3707_v0 }
 0x152   : > { %2908 = vmatpush1.bf16.msra.mxu0 %v2907_v9  ;;  %v1646_v38 = vsel %vm1636_vm7, %v3412_v23, %v3413_v10 }
 0x153   : > { %v2924_v39 = vpack.c.bf16 %v3418_v26, %v3413_v10  ;;  %v3421_v40 = vpop.permute.xlu0 %3420  ;;  %v1648_v15 = vsel %vm1636_vm7, %v3417_v14, %v3418_v26 }
 0x154   : > { %v3423_v16 = vunpack.i.h.bf16 %v3421_v40  ;;  %v3422_v17 = vunpack.i.l.bf16 %v3421_v40  ;;  %v3426_v19 = vpop.permute.xlu1 %3425  ;;  %v2909_v18 = vpack.c.bf16 %v1648_v15, %v1646_v38 }
 0x155   : > { %2925 = vmatpush3.bf16.msra.mxu1 %v2924_v39  ;;  %v3428_v41 = vunpack.i.h.bf16 %v3426_v19  ;;  %v3427_v28 = vunpack.i.l.bf16 %v3426_v19 }
 0x156   : > { %v1645_v27 = vsel %vm1636_vm7, %v3422_v17, %v3412_v23  ;;  %v1647_v20 = vsel %vm1636_vm7, %v3423_v16, %v3417_v14  ;;  %2910 = vmatprep.subr.bf16.mxu0 %v2909_v18  ;;  %2926 = vmatprep.subr.bf16.mxu1 %v3707_v0 }
 0x157   : > { %v2911_v42 = vpack.c.bf16 %v1647_v20, %v1645_v27  ;;  %v3431_v52 = vpop.permute.xlu0 %3430  ;;  %v1650_v57 = vsel %vm1636_vm7, %v3427_v28, %v3428_v41 }
 0x158   : > { %v3433_v49 = vunpack.i.h.bf16 %v3431_v52  ;;  %v3432_v54 = vunpack.i.l.bf16 %v3431_v52  ;;  %v3436_v56 = vpop.permute.xlu1 %3435 }
 0x159   : > { %v3438_v21 = vunpack.i.h.bf16 %v3436_v56  ;;  %v3437_v29 = vunpack.i.l.bf16 %v3436_v56  ;;  %2912 = vmatpush1.bf16.msra.mxu0 %v2911_v42 }
 0x15a   : > { %v2927_v22 = vpack.c.bf16 %v3433_v49, %v3428_v41  ;;  %v1652_v45 = vsel %vm1636_vm7, %v3432_v54, %v3433_v49 }
 0x15b   : > { %v1651_v47 = vsel %vm1636_vm7, %v3438_v21, %v3432_v54  ;;  %v1649_v30 = vsel %vm1636_vm7, %v3437_v29, %v3427_v28  ;;  %v3441_v59 = vpop.permute.xlu0 %3440  ;;  %v2913_v24 = vpack.c.bf16 %v1652_v45, %v1650_v57 }
 0x15c   : > { %v2915_v31 = vpack.c.bf16 %v1651_v47, %v1649_v30  ;;  %v3443_v61 = vunpack.i.h.bf16 %v3441_v59  ;;  %v3442_v4 = vunpack.i.l.bf16 %v3441_v59  ;;  %v3446_v62 = vpop.permute.xlu1 %3445  ;;  %2928 = vmatpush3.bf16.msra.mxu1 %v2927_v22 }
 0x15d   : > { %v3448_v25 = vunpack.i.h.bf16 %v3446_v62  ;;  %v3447_v35 = vunpack.i.l.bf16 %v3446_v62  ;;  %2914 = vmatprep.subr.bf16.mxu0 %v2913_v24  ;;  %2945 = vmatprep.subr.bf16.mxu1 %v3707_v0 }
 0x15e   : > { %2916 = vmatpush1.bf16.msra.mxu0 %v2915_v31  ;;  %v1876_v36 = vsel %vm1874_vm8, %v3442_v4, %v3443_v61 }
 0x15f   : > { %v2946_v32 = vpack.c.bf16 %v3448_v25, %v3443_v61  ;;  %v3451_v11 = vpop.permute.xlu0 %3450  ;;  %2693 = vmatmul.mubr.msk.f32.vlgmr.msra.gmra.mrb[12].mxu1 %vm345_vm2, %v1587_v58  ;;  %v1878_v50 = vsel %vm1874_vm8, %v3447_v35, %v3448_v25 }
 0x160   : > { %v3453_v46 = vunpack.i.h.bf16 %v3451_v11  ;;  %v3452_v37 = vunpack.i.l.bf16 %v3451_v11  ;;  %v3456_v48 = vpop.permute.xlu1 %3455  ;;  %v2929_v43 = vpack.c.bf16 %v1878_v50, %v1876_v36  ;;  %2711 = vmatprep.mubr.msk.f32.mxu1 %vm3709_vm0, %v4522_v2  ;;  %v1825_v36 = vld [vmem:[#allocation6 + $0x7] sm:$0x1] }
 0x161   : > { %2947 = vmatpush3.bf16.msra.mxu1 %v2946_v32  ;;  %2469 = vmatmul.mubr.msk.f32.vlgmr.msra.gmra.mrb[0].mxu0 %vm345_vm2, %v1587_v58  ;;  %v3458_v33 = vunpack.i.h.bf16 %v3456_v48  ;;  %v3457_v34 = vunpack.i.l.bf16 %v3456_v48 }
 0x162   : > { %v1875_v44 = vsel %vm1874_vm8, %v3452_v37, %v3442_v4  ;;  %v1877_v60 = vsel %vm1874_vm8, %v3453_v46, %v3447_v35  ;;  %2930 = vmatprep.subr.bf16.mxu0 %v2929_v43  ;;  %2948 = vmatprep.subr.bf16.mxu1 %v3707_v0 }
 0x163   : > { %v2931_v8 = vpack.c.bf16 %v1877_v60, %v1875_v44  ;;  %v3461_v63 = vpop.permute.xlu0 %3460  ;;  %1982 = vmatprep.mubr.f32.mxu0 %v4522_v2  ;;  %v1880_v5 = vsel %vm1874_vm8, %v3457_v34, %v3458_v33 }
 0x164   : > { %v3463_v13 = vunpack.i.h.bf16 %v3461_v63  ;;  %v3462_v51 = vunpack.i.l.bf16 %v3461_v63  ;;  %v3466_v55 = vpop.permute.xlu1 %3465 }
 0x165   : > { %v3468_v53 = vunpack.i.h.bf16 %v3466_v55  ;;  %v3467_v1 = vunpack.i.l.bf16 %v3466_v55  ;;  %2932 = vmatpush1.bf16.msra.mxu0 %v2931_v8 }
 0x166   : > { %v2949_v3 = vpack.c.bf16 %v3463_v13, %v3458_v33  ;;  %v1882_v6 = vsel %vm1874_vm8, %v3462_v51, %v3463_v13 }
 0x167   : > { %v1881_v7 = vsel %vm1874_vm8, %v3468_v53, %v3462_v51  ;;  %v1879_v9 = vsel %vm1874_vm8, %v3467_v1, %v3457_v34  ;;  %v3471_v10 = vpop.permute.xlu0 %3470  ;;  %v2933_v23 = vpack.c.bf16 %v1882_v6, %v1880_v5 }
 0x168   : > { %v2935_v12 = vpack.c.bf16 %v1881_v7, %v1879_v9  ;;  %v3473_v26 = vunpack.i.h.bf16 %v3471_v10  ;;  %v3472_v14 = vunpack.i.l.bf16 %v3471_v10  ;;  %v3476_v38 = vpop.permute.xlu1 %3475  ;;  %2950 = vmatpush3.bf16.msra.mxu1 %v2949_v3 }
 0x169   : > { %v3478_v39 = vunpack.i.h.bf16 %v3476_v38  ;;  %v3477_v40 = vunpack.i.l.bf16 %v3476_v38  ;;  %2934 = vmatprep.subr.bf16.mxu0 %v2933_v23  ;;  %2951 = vmatprep.subr.bf16.mxu1 %v3707_v0 }
 0x16a   : > { %2936 = vmatpush1.bf16.msra.mxu0 %v2935_v12  ;;  %v1884_v15 = vsel %vm1874_vm8, %v3472_v14, %v3473_v26 }
 0x16b   : > { %v2952_v16 = vpack.c.bf16 %v3478_v39, %v3473_v26  ;;  %v3481_v17 = vpop.permute.xlu0 %3480  ;;  %v1886_v19 = vsel %vm1874_vm8, %v3477_v40, %v3478_v39 }
 0x16c   : > { %v3483_v18 = vunpack.i.h.bf16 %v3481_v17  ;;  %v3482_v27 = vunpack.i.l.bf16 %v3481_v17  ;;  %v3486_v20 = vpop.permute.xlu1 %3485  ;;  %v2937_v41 = vpack.c.bf16 %v1886_v19, %v1884_v15 }
 0x16d   : > { %2953 = vmatpush3.bf16.msra.mxu1 %v2952_v16  ;;  %v3488_v52 = vunpack.i.h.bf16 %v3486_v20  ;;  %v3487_v49 = vunpack.i.l.bf16 %v3486_v20 }
 0x16e   : > { %v1883_v28 = vsel %vm1874_vm8, %v3482_v27, %v3472_v14  ;;  %v1885_v42 = vsel %vm1874_vm8, %v3483_v18, %v3477_v40  ;;  %2938 = vmatprep.subr.bf16.mxu0 %v2937_v41  ;;  %2954 = vmatprep.subr.bf16.mxu1 %v3707_v0 }
 0x16f   : > { %v2939_v54 = vpack.c.bf16 %v1885_v42, %v1883_v28  ;;  %v3491_v56 = vpop.permute.xlu0 %3490  ;;  %v1888_v30 = vsel %vm1874_vm8, %v3487_v49, %v3488_v52 }
 0x170   : > { %v3493_v21 = vunpack.i.h.bf16 %v3491_v56  ;;  %v3492_v29 = vunpack.i.l.bf16 %v3491_v56  ;;  %v3496_v22 = vpop.permute.xlu1 %3495 }
 0x171   : > { %v3498_v57 = vunpack.i.h.bf16 %v3496_v22  ;;  %v3497_v45 = vunpack.i.l.bf16 %v3496_v22  ;;  %2940 = vmatpush1.bf16.msra.mxu0 %v2939_v54 }
 0x172   : > { %v2955_v47 = vpack.c.bf16 %v3493_v21, %v3488_v52  ;;  %v1890_v59 = vsel %vm1874_vm8, %v3492_v29, %v3493_v21 }
 0x173   : > { %v1889_v24 = vsel %vm1874_vm8, %v3498_v57, %v3492_v29  ;;  %v1887_v31 = vsel %vm1874_vm8, %v3497_v45, %v3487_v49  ;;  %v3501_v61 = vpop.permute.xlu0 %3500  ;;  %v2941_v4 = vpack.c.bf16 %v1890_v59, %v1888_v30 }
 0x174   : > { %v2943_v62 = vpack.c.bf16 %v1889_v24, %v1887_v31  ;;  %v3503_v58 = vunpack.i.h.bf16 %v3501_v61  ;;  %v3502_v25 = vunpack.i.l.bf16 %v3501_v61  ;;  %v3506_v35 = vpop.permute.xlu1 %3505  ;;  %2956 = vmatpush3.bf16.msra.mxu1 %v2955_v47 }
 0x175   : > { %v3508_v32 = vunpack.i.h.bf16 %v3506_v35  ;;  %v3507_v11 = vunpack.i.l.bf16 %v3506_v35  ;;  %2942 = vmatprep.subr.bf16.mxu0 %v2941_v4  ;;  %2973 = vmatprep.subr.bf16.mxu1 %v3707_v0 }
 0x176   : > { %2944 = vmatpush1.bf16.msra.mxu0 %v2943_v62  ;;  %v2114_v50 = vsel %vm2112_vm9, %v3502_v25, %v3503_v58 }
 0x177   : > { %v2974_v46 = vpack.c.bf16 %v3508_v32, %v3503_v58  ;;  %v3511_v37 = vpop.permute.xlu0 %3510  ;;  %2712 = vmatmul.mubr.msk.f32.vlgmr.msra.gmra.mrb[14].mxu1 %vm345_vm2, %v1825_v36  ;;  %v2116_v48 = vsel %vm2112_vm9, %v3507_v11, %v3508_v32 }
 0x178   : > { %v3513_v43 = vunpack.i.h.bf16 %v3511_v37  ;;  %v3512_v44 = vunpack.i.l.bf16 %v3511_v37  ;;  %v3516_v60 = vpop.permute.xlu1 %3515  ;;  %v2957_v33 = vpack.c.bf16 %v2116_v48, %v2114_v50  ;;  %2730 = vmatprep.mubr.msk.f32.mxu1 %vm3709_vm0, %v4522_v2 }
 0x179   : > { %2975 = vmatpush3.bf16.msra.mxu1 %v2974_v46  ;;  %2471 = vmatmul.mubr.msk.f32.vlgmr.msra.gmra.mrb[0].mxu0 %vm345_vm2, %v1825_v36  ;;  %v3518_v63 = vunpack.i.h.bf16 %v3516_v60  ;;  %v3517_v13 = vunpack.i.l.bf16 %v3516_v60 }
 0x17a   : > { %v2113_v34 = vsel %vm2112_vm9, %v3512_v44, %v3502_v25  ;;  %v2115_v8 = vsel %vm2112_vm9, %v3513_v43, %v3507_v11  ;;  %2958 = vmatprep.subr.bf16.mxu0 %v2957_v33  ;;  %2976 = vmatprep.subr.bf16.mxu1 %v3707_v0 }
 0x17b   : > { %v2959_v51 = vpack.c.bf16 %v2115_v8, %v2113_v34  ;;  %v3521_v55 = vpop.permute.xlu0 %3520  ;;  %2220 = vmatprep.mubr.f32.mxu0 %v4522_v2  ;;  %v2118_v9 = vsel %vm2112_vm9, %v3517_v13, %v3518_v63 }
 0x17c   : > { %v3523_v53 = vunpack.i.h.bf16 %v3521_v55  ;;  %v3522_v1 = vunpack.i.l.bf16 %v3521_v55  ;;  %v3526_v3 = vpop.permute.xlu1 %3525 }
 0x17d   : > { %v3528_v5 = vunpack.i.h.bf16 %v3526_v3  ;;  %v3527_v6 = vunpack.i.l.bf16 %v3526_v3  ;;  %2960 = vmatpush1.bf16.msra.mxu0 %v2959_v51 }
 0x17e   : > { %v2977_v7 = vpack.c.bf16 %v3523_v53, %v3518_v63  ;;  %v2120_v10 = vsel %vm2112_vm9, %v3522_v1, %v3523_v53 }
 0x17f   : > { %v2119_v23 = vsel %vm2112_vm9, %v3528_v5, %v3522_v1  ;;  %v2117_v12 = vsel %vm2112_vm9, %v3527_v6, %v3517_v13  ;;  %v3531_v26 = vpop.permute.xlu0 %3530  ;;  %v2961_v14 = vpack.c.bf16 %v2120_v10, %v2118_v9 }
 0x180   : > { %v2963_v38 = vpack.c.bf16 %v2119_v23, %v2117_v12  ;;  %v3533_v39 = vunpack.i.h.bf16 %v3531_v26  ;;  %v3532_v2 = vunpack.i.l.bf16 %v3531_v26  ;;  %v3536_v40 = vpop.permute.xlu1 %3535  ;;  %2978 = vmatpush3.bf16.msra.mxu1 %v2977_v7  ;;  %v2301_v7 = vstv %s2300_s12 }
 0x181   : > { %v3538_v15 = vunpack.i.h.bf16 %v3536_v40  ;;  %v3537_v16 = vunpack.i.l.bf16 %v3536_v40  ;;  %2962 = vmatprep.subr.bf16.mxu0 %v2961_v14  ;;  %2979 = vmatprep.subr.bf16.mxu1 %v3707_v0 }
 0x182   : > { %2964 = vmatpush1.bf16.msra.mxu0 %v2963_v38  ;;  %v2122_v17 = vsel %vm2112_vm9, %v3532_v2, %v3533_v39 }
 0x183   : > { %v2980_v19 = vpack.c.bf16 %v3538_v15, %v3533_v39  ;;  %v3541_v18 = vpop.permute.xlu0 %3540  ;;  %v2124_v27 = vsel %vm2112_vm9, %v3537_v16, %v3538_v15 }
 0x184   : > { %v3543_v20 = vunpack.i.h.bf16 %v3541_v18  ;;  %v3542_v41 = vunpack.i.l.bf16 %v3541_v18  ;;  %v3546_v28 = vpop.permute.xlu1 %3545  ;;  %v2965_v42 = vpack.c.bf16 %v2124_v27, %v2122_v17 }
 0x185   : > { %2981 = vmatpush3.bf16.msra.mxu1 %v2980_v19  ;;  %v3548_v54 = vunpack.i.h.bf16 %v3546_v28  ;;  %v3547_v56 = vunpack.i.l.bf16 %v3546_v28  ;;  %v2330_v28 = vlaneseq }
 0x186   : > { %v2121_v52 = vsel %vm2112_vm9, %v3542_v41, %v3532_v2  ;;  %v2123_v49 = vsel %vm2112_vm9, %v3543_v20, %v3537_v16  ;;  %2966 = vmatprep.subr.bf16.mxu0 %v2965_v42  ;;  %2982 = vmatprep.subr.bf16.mxu1 %v3707_v0  ;;  %v2063_v0 = vld [vmem:[#allocation6 + $0x8] sm:$0x1]  ;;  %v3718_v20 = vmov 1966171168  }
 0x187   : > { %v2967_v21 = vpack.c.bf16 %v2123_v49, %v2121_v52  ;;  %v3551_v29 = vpop.permute.xlu0 %3550  ;;  %v2126_v24 = vsel %vm2112_vm9, %v3547_v56, %v3548_v54  ;;  %v2328_v41 = vunpack.c.l.s4 %v3718_v20  ;;  %v2331_v52 = vshrl.u32 %v2330_v28, 7 }
 0x188   : > { %v3553_v22 = vunpack.i.h.bf16 %v3551_v29  ;;  %v3552_v57 = vunpack.i.l.bf16 %v3551_v29  ;;  %v3556_v45 = vpop.permute.xlu1 %3555  ;;  %vm2352_vm10 = vcmp.lt.s32.totalorder %v2330_v28, 288 }
 0x189   : > { %v3558_v47 = vunpack.i.h.bf16 %v3556_v45  ;;  %v3557_v30 = vunpack.i.l.bf16 %v3556_v45  ;;  %2968 = vmatpush1.bf16.msra.mxu0 %v2967_v21  ;;  %v2329_v42 = vunpack.c.0.s8 %v2328_v41 }
 0x18a   : > { %v2983_v59 = vpack.c.bf16 %v3553_v22, %v3548_v54  ;;  %v2128_v31 = vsel %vm2112_vm9, %v3552_v57, %v3553_v22 }
 0x18b   : > { %v2127_v61 = vsel %vm2112_vm9, %v3558_v47, %v3552_v57  ;;  %v2125_v4 = vsel %vm2112_vm9, %v3557_v30, %v3547_v56  ;;  %v2969_v62 = vpack.c.bf16 %v2128_v31, %v2126_v24  ;;  %v2332_v56 = vsub.s32 %v2329_v42, %v2331_v52 }
 0x18c   : > { %v2971_v58 = vpack.c.bf16 %v2127_v61, %v2125_v4  ;;  %2984 = vmatpush3.bf16.msra.mxu1 %v2983_v59 }
 0x18d   : > { %2970 = vmatprep.subr.bf16.mxu0 %v2969_v62 }
 0x18e   : > { %2972 = vmatpush1.bf16.msra.mxu0 %v2971_v58 }
 0x18f   : > { %2731 = vmatmul.mubr.msk.f32.vlgmr.msra.gmra.mrb[16].mxu1 %vm345_vm2, %v2063_v0 }
 0x191   : > { %2473 = vmatmul.mubr.msk.f32.vlgmr.msra.gmra.mrb[0].mxu0 %vm345_vm2, %v2063_v0 }
 0x1ba   : > { %v486_v25 = vpop.f32.mrb[0].mxu1 }
 0x1bb   : > { %v2580_v35 = vpop.f32.mrb[1].mxu1 }
 0x1ca   : > { %v630_v36 = vpop.f32.mrb[2].mxu1 }
 0x1cb   : > { %v631_v32 = vadd.f32 %v630_v36, %v486_v25  ;;  %v2599_v11 = vpop.f32.mrb[3].mxu1 }
 0x1da   : > { %v865_v50 = vpop.f32.mrb[4].mxu1 }
 0x1db   : > { %v871_v46 = vadd.f32 %v865_v50, %v631_v32  ;;  %v2618_v37 = vpop.f32.mrb[5].mxu1 }
 0x1ea   : > { %v1103_v48 = vpop.f32.mrb[6].mxu1 }
 0x1eb   : > { %v1109_v43 = vadd.f32 %v1103_v48, %v871_v46  ;;  %v2637_v44 = vpop.f32.mrb[7].mxu1 }
 0x202   : > { %v1341_v60 = vpop.f32.mrb[8].mxu1 }
 0x203   : > { %v1347_v33 = vadd.f32 %v1341_v60, %v1109_v43  ;;  %v2656_v34 = vpop.f32.mrb[9].mxu1 }
 0x21a   : > { %v1579_v8 = vpop.f32.mrb[10].mxu1 }
 0x21b   : > { %v1585_v63 = vadd.f32 %v1579_v8, %v1347_v33  ;;  %v2675_v13 = vpop.f32.mrb[11].mxu1 }
 0x232   : > { %v1817_v51 = vpop.f32.mrb[12].mxu1 }
 0x233   : > { %v1823_v55 = vadd.f32 %v1817_v51, %v1585_v63  ;;  %v2694_v53 = vpop.f32.mrb[13].mxu1 }
 0x24a   : > { %v2055_v1 = vpop.f32.mrb[14].mxu1 }
 0x24b   : > { %v2061_v3 = vadd.f32 %v2055_v1, %v1823_v55  ;;  %v2713_v5 = vpop.f32.mrb[15].mxu1 }
 0x262   : > { %v2293_v6 = vpop.f32.mrb[16].mxu1 }
 0x263   : > { %v2299_v9 = vadd.f32 %v2293_v6, %v2061_v3  ;;  %v2732_v10 = vpop.f32.mrb[17].mxu1 }
 0x264   : > { %v2222_v23 = vpop.f32.mrb[0].mxu0 }
 0x265   : > { %v2304_v12 = vadd.f32 %v2301_v7, %v2299_v9  ;;  %v2302_v26 = vadd.f32 %v2301_v7, %v2222_v23  ;;  %v2224_v14 = vpop.f32.mrb[1].mxu0 }
 0x266   : > { %v2303_v38 = vadd.f32 %v2301_v7, %v2224_v14 }
 0x267   : > { %v2477_v39 = vmul.f32 -1.442695, %v2304_v12  ;;  %v2475_v2 = vmul.f32 -1.442695, %v2302_v26 }
 0x268   : > { %v2476_v40 = vmul.f32 -1.442695, %v2303_v38 }
 0x269   : > { %3559 = vpow2.f32 %v2477_v39 }
 0x26a   : > { %3561 = vpow2.f32 %v2475_v2 }
 0x26b   : > { %3563 = vpow2.f32 %v2476_v40 }
 0x273   : > { %v3560_v15 = vpop.eup %3559 }
 0x274   : > { %v3562_v16 = vpop.eup %3561  ;;  %v2316_v17 = vadd.f32 1.0, %v3560_v15 }
 0x275   : > { %v3564_v19 = vpop.eup %3563  ;;  %v2314_v18 = vadd.f32 1.0, %v3562_v16 }
 0x276   : > { %3565 = vrcp.f32 %v2316_v17  ;;  %v2315_v27 = vadd.f32 1.0, %v3564_v19 }
 0x277   : > { %3567 = vrcp.f32 %v2314_v18 }
 0x278   : > { %3569 = vrcp.f32 %v2315_v27 }
 0x280   : > { %v3566_v49 = vpop.eup %3565 }
 0x281   : > { %v3568_v54 = vpop.eup %3567  ;;  %v2340_v57 = vrot.slane %v3566_v49, %v2332_v56 }
 0x282   : > { %v3570_v21 = vpop.eup %3569 }
 0x283   : > { %v2326_v29 = vcombine.low %v3568_v54, %v3570_v21 }
 0x285   : > { %v2333_v22 = vrot.slane %v2326_v29, %v2332_v56 }
 0x287   : > { %v2341_v45 = vcombine.low %v2333_v22, %v2340_v57 }
 0x289   : > { %v2348_v47 = vrot.slane %v2341_v45, %v2332_v56 }
 0x28b   : > { %2354 = vst.msk [vmem:[%s204_s29] sm:$0x7] %vm2352_vm10, %v2348_v47 }
 0x28c   : > { %3642 = shalt.err (!%p3639_p12)
}
 0x28d   : > { %s3643_s26 = scalar_lea.hbm %s4459_s7, 48  ;;  %s3647_s27 = scalar_lea.hbm %s4506_s3, 96 }
 0x28e   : > { %p3644_p2 = scmp.ne.s32.totalorder %s4459_s7, %s3643_s26  ;;  %p3648_p4 = scmp.lt.u32.totalorder %s4459_s7, %s4506_s3 }
 0x28f   : > { %p3649_p5 = scmp.lt.u32.totalorder %s3647_s27, %s3643_s26  ;;  %p3651_p11 = scmp.lt.u32.totalorder %s3643_s26, %s4459_s7 }
 0x290   : > { %p3645_p1 = pnand %p3644_p2, %p4530_p9 }
 0x291   : > { %p3650_p8 = por %p3649_p5, %p3648_p4 }
 0x292   : > { %p3646_p6 = pneg %p3645_p1 }
 0x293   : > { %p3652_p0 = por %p3651_p11, %p3650_p8 }
 0x295   : > { %p3653_p10 = pnand %p3652_p0, %p3646_p6 }
 0x297   : > { %3656 = shalt.err (!%p3653_p10)
}
 0x298   : > { %3012 = dma.vmem_to_hbm [thread:$0]  (%p4530_p9), %s4461_s30, 48, %s4459_s7, %s2356_s8  }
 0x299 PF: > { %s2382_s11 = sand.u32 1, %s3687_s14   ;;  %p4531_p13 = scmp.ne.s32.totalorder %s4513_s20, 0 }
 0x29a   : > { %p4532_p3 = scmp.ge.s32.totalorder %s3699_s17, 2  ;;  %s2383_s12 = scalar_lea.sflag [#allocation5], %s2382_s11 }
 0x29c   : > { %p3023_p7 = pnand %p4532_p3, %p4531_p13 }
 0x29e   : > { %3682 = dma.done.wait (!%p3023_p7), %s2383_s12, 48  }
 0x29f   : > { %3684 = vsyncadd (!%p3023_p7), %s2383_s12, 4294967248  ;;  %p18_p12 = scmp.ge.s32.totalorder %s3799_s25, 4   ;;  %s4533_s14 = smov %s3691_s15 }
 0x2a0   : > { %s4534_s15 = smov %s3695_s16  ;;  %s4535_s16 = smov %s3831_s18 }
 0x2a1   : > { %s4536_s17 = smov %s3799_s25  ;;  %20 = sbr.rel (!%p18_p12) target bundleno = 8 (0x8), region = 89 }
 0x2a8   :  { %2388 = vsyncpa [#allocation4], 1 }
 0x2a9   :  { %2390 = vsyncpa [#allocation4 + $0x1], 1 }
 0x2aa   :  { %2391 = vsyncpa [#allocation7], 1 }
 0x2ab   :  { %2392 = vsyncpa [#allocation5], 1 }
 0x2ac   :  { %2394 = vsyncpa [#allocation5 + $0x1], 1 }

</bundles_post_ra>
